<compile_context>
chip_gen: v6e
topology: v6e:2x2x1
jax: 0.10.0
libtpu: 0.0.40
codegen_flags: <defaults>
</compile_context>

<pallas_src>
import functools
import math

import jax
import jax.numpy as jnp
import numpy as np
from jax.experimental import pallas as pl
from jax.experimental.pallas import tpu as pltpu


def _layernorm(x, g, b, eps=1e-6):
    # One-pass LN: E[x^2] - E[x]^2 (the two reductions are independent -> better
    # scheduling than mean / mean((x-mu)^2)); rsqrt goes to the EUP.
    mu = jnp.mean(x, axis=-1, keepdims=True)
    mu2 = jnp.mean(x * x, axis=-1, keepdims=True)
    var = jnp.maximum(mu2 - mu * mu, 0.0)
    return (x - mu) * jax.lax.rsqrt(var + eps) * g + b


def _blocks_kernel(num_heads, head_dim, num_layers, batch_block, seq_len, has_mask,
                   *refs):
    """One grid step = one transformer Block for one batch block & one layer.

    Grid is (B // Bt, num_layers).  The activation lives in `acc_ref` (VMEM
    scratch) across the layer axis and is only written back to HBM on the last
    layer.  CORRECTNESS NOTE: this relies on the layer axis being the innermost,
    sequentially iterated ("arbitrary") grid axis and the scratch persisting
    across grid steps; do not reorder the grid or mark the layer axis parallel.
    """
    if has_mask:
        (x_ref, bias_ref,
         wqkv_ref, bqkv_ref, wo_ref, bo_ref,
         g1_ref, be1_ref, w1_ref, bf1_ref, w2_ref, bf2_ref,
         g2_ref, be2_ref,
         o_ref, acc_ref) = refs
    else:
        (x_ref,
         wqkv_ref, bqkv_ref, wo_ref, bo_ref,
         g1_ref, be1_ref, w1_ref, bf1_ref, w2_ref, bf2_ref,
         g2_ref, be2_ref,
         o_ref, acc_ref) = refs
        bias_ref = None

    layer = pl.program_id(1)

    @pl.when(layer == 0)
    def _():
        acc_ref[...] = x_ref[0].astype(jnp.float32)   # load activation once per batch block

    x = acc_ref[...]                                  # (Bt*S, D), resident across layers
    M, D = x.shape
    Bt, S = batch_block, seq_len
    H, hd = num_heads, head_dim
    wdt = wqkv_ref.dtype                              # MXU operand dtype (f32 or bf16)

    # ---- LayerNorm 1 + fused QKV projection (single MXU matmul, M = Bt*S) ----
    h1 = _layernorm(x, g1_ref[0], be1_ref[0])
    qkv = jnp.dot(h1.astype(wdt), wqkv_ref[0],
                  preferred_element_type=jnp.float32) + bqkv_ref[0]

    # 1/sqrt(head_dim) is pre-folded into wq / bq in the wrapper -> no scale here.
    q = qkv[:, :D]
    k = qkv[:, D:2 * D]
    v = qkv[:, 2 * D:]

    # Batched-head layout (Bt*H, S, hd): one contraction per stage, no per-head loop.
    # TODO(synk): the head split still crosses the lane axis; at real ViT sizes a
    # pltpu.einshape-based (lane-layout-aware) relayout would avoid the XLU copies.
    def to_heads(t):
        return t.reshape(Bt, S, H, hd).transpose(0, 2, 1, 3).reshape(Bt * H, S, hd)

    qh, kh, vh = to_heads(q), to_heads(k), to_heads(v)

    s = jnp.einsum('bqd,bkd->bqk', qh, kh, preferred_element_type=jnp.float32)
    if has_mask:
        bias = bias_ref[0]                             # (Bt, S) additive mask bias
        s = (s.reshape(Bt, H, S, S) + bias[:, None, None, :]).reshape(Bt * H, S, S)

    # Numerically stable softmax; denominator reciprocal on the (otherwise idle) EUP.
    s_max = jnp.max(s, axis=-1, keepdims=True)
    e = jnp.exp(s - s_max)
    p = e * pl.reciprocal(jnp.sum(e, axis=-1, keepdims=True), approx=True)

    ctx = jnp.einsum('bqk,bkd->bqd', p, vh, preferred_element_type=jnp.float32)
    attn = ctx.reshape(Bt, H, S, hd).transpose(0, 2, 1, 3).reshape(M, D)  # torch merge_last order

    x1 = x + jnp.dot(attn.astype(wdt), wo_ref[0],
                     preferred_element_type=jnp.float32) + bo_ref[0]

    # ---- LayerNorm 2 + position-wise feed-forward (exact erf GELU) ----
    h2 = _layernorm(x1, g2_ref[0], be2_ref[0])
    f = jnp.dot(h2.astype(wdt), w1_ref[0],
                preferred_element_type=jnp.float32) + bf1_ref[0]
    f = 0.5 * f * (1.0 + jax.lax.erf(f * (1.0 / math.sqrt(2.0))))   # F.gelu (exact)
    f = jnp.dot(f.astype(wdt), w2_ref[0],
                preferred_element_type=jnp.float32) + bf2_ref[0]

    acc_ref[...] = x1 + f                              # residual 2, stays in VMEM

    @pl.when(layer == num_layers - 1)
    def _():
        # At real ViT D=768 (6*128 lanes) this store is lane-dense already.
        o_ref[0] = acc_ref[...].astype(o_ref.dtype)


def transformer_forward(x, params, mask=None, *, num_heads,
                        batch_block=None, weights_dtype=jnp.float32):
    """Pallas equivalent of Transformer.forward(x, mask) (eval mode)."""
    B, S, D = x.shape
    L = len(params)
    F_dim = params[0]["w1"].shape[1]
    head_dim = D // num_heads

    # ---- batch blocking: one grid step processes Bt batch elements, so layer
    # weights are re-streamed once per batch block (not per element) and the MXU
    # M dimension is Bt*S.  VMEM budget per step: activation block + (Bt*S,3D)
    # qkv + (Bt*S,F) GELU intermediate + (Bt*H,S,S) scores next to the
    # double-buffered layer weights -> pick Bt smaller on v7x (64 MiB VMEM) than
    # on v5e/v6e (128 MiB).
    if batch_block is None:
        act_budget = 2 * 1024 * 1024                          # ~2 MiB f32 activation slab
        cap = max(1, act_budget // (S * max(D, F_dim) * 4))
        batch_block = 1
        for c in range(1, B + 1):
            if B % c == 0 and c <= cap:
                batch_block = c
    Bt = batch_block
    assert B % Bt == 0, "batch_block must divide batch size"
    nb = B // Bt

    has_mask = mask is not None

    # Stack per-layer params along a leading layer axis; fuse Q/K/V weights and
    # pre-fold the 1/sqrt(head_dim) attention scale into wq / bq (one-time prep).
    scale = 1.0 / math.sqrt(head_dim)
    stack = lambda key: jnp.stack([p[key] for p in params], axis=0)
    wqkv = jnp.stack([jnp.concatenate([p["wq"] * scale, p["wk"], p["wv"]], axis=1)
                      for p in params]).astype(weights_dtype)
    bqkv = jnp.stack([jnp.concatenate([p["bq"] * scale, p["bk"], p["bv"]], axis=1)
                      for p in params])
    wo, bo = stack("wo").astype(weights_dtype), stack("bo")
    w1, bf1 = stack("w1").astype(weights_dtype), stack("bf1")
    w2, bf2 = stack("w2").astype(weights_dtype), stack("bf2")
    g1, be1 = stack("g1"), stack("be1")
    g2, be2 = stack("g2"), stack("be2")

    kernel = functools.partial(_blocks_kernel, num_heads, head_dim, L, Bt, S, has_mask)

    def wspec(shape):  # per-layer weight block (double-buffered -> prefetch layer l+1)
        return pl.BlockSpec((1,) + shape, lambda b, l: (l, 0, 0))

    inputs = [x.reshape(nb, Bt * S, D)]
    in_specs = [pl.BlockSpec((1, Bt * S, D), lambda b, l: (b, 0, 0))]   # activations
    if has_mask:
        bias = (-10000.0 * (1.0 - mask.astype(jnp.float32))).reshape(nb, Bt, S)
        inputs.append(bias)
        in_specs.append(pl.BlockSpec((1, Bt, S), lambda b, l: (b, 0, 0)))
    # (when mask is None the bias input / DMA / broadcast add are dropped entirely)

    in_specs += [
        wspec((D, 3 * D)), wspec((1, 3 * D)),              # fused QKV weight / bias
        wspec((D, D)), wspec((1, D)),                      # attention output proj
        wspec((1, D)), wspec((1, D)),                      # norm1 gamma / beta
        wspec((D, F_dim)), wspec((1, F_dim)),              # fc1
        wspec((F_dim, D)), wspec((1, D)),                  # fc2
        wspec((1, D)), wspec((1, D)),                      # norm2 gamma / beta
    ]
    inputs += [wqkv, bqkv, wo, bo, g1, be1, w1, bf1, w2, bf2, g2, be2]

    # VMEM limit per chip generation (v5e/v6e: 128 MiB physical, v7x: 64 MiB);
    # use ~3/4 of it so compiler-managed intermediates keep headroom.
    try:
        vmem_cap = pltpu.get_tpu_info().vmem_capacity_bytes
    except Exception:
        vmem_cap = 64 * 1024 * 1024
    vmem_limit = int(min(vmem_cap * 3 // 4, 100 * 1024 * 1024))

    out = pl.pallas_call(
        kernel,
        out_shape=jax.ShapeDtypeStruct((nb, Bt * S, D), x.dtype),
        grid=(nb, L),
        in_specs=in_specs,
        out_specs=pl.BlockSpec((1, Bt * S, D), lambda b, l: (b, 0, 0)),
        scratch_shapes=[pltpu.VMEM((Bt * S, D), jnp.float32)],   # layer-resident activation
        compiler_params=pltpu.CompilerParams(
            # batch-block axis "parallel" (megacore-shardable when nb >= 2);
            # layer axis must stay innermost + "arbitrary" so acc_ref carries.
            dimension_semantics=("parallel", "arbitrary"),
            vmem_limit_bytes=vmem_limit,
        ),
    )(*inputs)
    return out.reshape(B, S, D)


# ---------------- deterministic parameter init (synthetic) ----------------
def init_params(key, num_layers, dim, ff_dim):
    params = []
    for layer in range(num_layers):
        kl = jax.random.fold_in(key, layer)

        def lin(idx, din, dout):
            kw = jax.random.fold_in(kl, 2 * idx)
            kb = jax.random.fold_in(kl, 2 * idx + 1)
            w = jax.random.normal(kw, (dout, din), jnp.float32) * 0.02   # torch (out,in)
            b = jax.random.normal(kb, (dout,), jnp.float32) * 0.02
            return w.T, b.reshape(1, dout)                               # pre-transpose

        wq, bq = lin(0, dim, dim)
        wk, bk = lin(1, dim, dim)
        wv, bv = lin(2, dim, dim)
        wo, bo = lin(3, dim, dim)
        w1, bf1 = lin(4, dim, ff_dim)
        w2, bf2 = lin(5, ff_dim, dim)
        params.append(dict(
            wq=wq, bq=bq, wk=wk, bk=bk, wv=wv, bv=bv, wo=wo, bo=bo,
            w1=w1, bf1=bf1, w2=w2, bf2=bf2,
            g1=jnp.ones((1, dim), jnp.float32), be1=jnp.zeros((1, dim), jnp.float32),
            g2=jnp.ones((1, dim), jnp.float32), be2=jnp.zeros((1, dim), jnp.float32),
        ))
    return params


# ---------------- pure-JAX reference (mirrors the PyTorch code) ----------------
def _ref_block(x, mask, p, num_heads):
    def ln(t, g, b):
        mu = t.mean(-1, keepdims=True)
        var = ((t - mu) ** 2).mean(-1, keepdims=True)
        return (t - mu) / jnp.sqrt(var + 1e-6) * g[0] + b[0]

    B, S, D = x.shape
    hd = D // num_heads
    h1 = ln(x, p["g1"], p["be1"])
    q = h1 @ p["wq"] + p["bq"][0]
    k = h1 @ p["wk"] + p["bk"][0]
    v = h1 @ p["wv"] + p["bv"][0]
    split = lambda t: t.reshape(B, S, num_heads, hd).transpose(0, 2, 1, 3)
    q, k, v = split(q), split(k), split(v)
    scores = (q @ jnp.swapaxes(k, -2, -1)) / np.sqrt(hd)
    if mask is not None:
        scores = scores - 10000.0 * (1.0 - mask[:, None, None, :])
    scores = jax.nn.softmax(scores, axis=-1)
    h = (scores @ v).transpose(0, 2, 1, 3).reshape(B, S, D)
    x = x + (h @ p["wo"] + p["bo"][0])
    h2 = ln(x, p["g2"], p["be2"])
    f = h2 @ p["w1"] + p["bf1"][0]
    f = 0.5 * f * (1.0 + jax.scipy.special.erf(f / np.sqrt(2.0)))
    f = f @ p["w2"] + p["bf2"][0]
    return x + f


def _ref_transformer(x, params, mask, num_heads):
    for p in params:
        x = _ref_block(x, mask, p, num_heads)
    return x


if __name__ == "__main__":
    # small shapes consistent with the module: B=2, S=8, D=32, heads=4, ff=64, layers=2
    NUM_LAYERS, DIM, NUM_HEADS, FF_DIM = 2, 32, 4, 64
    B, S = 2, 8

    key = jax.random.PRNGKey(0)
    kx, kp = jax.random.split(key)
    x = jax.random.normal(kx, (B, S, DIM), jnp.float32)
    params = init_params(kp, NUM_LAYERS, DIM, FF_DIM)

    # --- no mask (static-mask fast path: bias input dropped entirely) ---
    out = transformer_forward(x, params, mask=None, num_heads=NUM_HEADS)
    out = jax.block_until_ready(out)
    ref = _ref_transformer(x, params, None, NUM_HEADS)
    assert out.shape == (B, S, DIM)
    assert np.allclose(np.asarray(out), np.asarray(ref), rtol=1e-4, atol=1e-4)

    # --- with a padding mask ---
    mask = jnp.array([[1, 1, 1, 1, 1, 1, 1, 1],
                      [1, 1, 1, 1, 1, 0, 0, 0]], dtype=jnp.float32)
    out_m = jax.block_until_ready(
        transformer_forward(x, params, mask=mask, num_heads=NUM_HEADS))
    ref_m = _ref_transformer(x, params, mask, NUM_HEADS)
    assert np.allclose(np.asarray(out_m), np.asarray(ref_m), rtol=1e-4, atol=1e-4)

    # --- bf16 MXU-operand path (what real ViT sizes / v7x would use), loose check ---
    out_bf16 = jax.block_until_ready(
        transformer_forward(x, params, mask=None, num_heads=NUM_HEADS,
                            weights_dtype=jnp.bfloat16))
    assert np.allclose(np.asarray(out_bf16), np.asarray(ref), rtol=5e-2, atol=5e-2)

    # TODO(synk): dropout layers are treated as identity (eval mode); training-mode
    # stochastic dropout is not implemented.
    print("KERNEL_OK")
</pallas_src>

<mosaic_0001>
module attributes {stable_mosaic.version = 11 : i64} {
  func.func @_blocks_kernel(%arg0: i32, %arg1: i32, %arg2: memref<1x16x32xf32, #tpu.memory_space<vmem>>, %arg3: memref<1x32x96xf32, #tpu.memory_space<vmem>>, %arg4: memref<1x1x96xf32, #tpu.memory_space<vmem>>, %arg5: memref<1x32x32xf32, #tpu.memory_space<vmem>>, %arg6: memref<1x1x32xf32, #tpu.memory_space<vmem>>, %arg7: memref<1x1x32xf32, #tpu.memory_space<vmem>>, %arg8: memref<1x1x32xf32, #tpu.memory_space<vmem>>, %arg9: memref<1x32x64xf32, #tpu.memory_space<vmem>>, %arg10: memref<1x1x64xf32, #tpu.memory_space<vmem>>, %arg11: memref<1x64x32xf32, #tpu.memory_space<vmem>>, %arg12: memref<1x1x32xf32, #tpu.memory_space<vmem>>, %arg13: memref<1x1x32xf32, #tpu.memory_space<vmem>>, %arg14: memref<1x1x32xf32, #tpu.memory_space<vmem>>, %arg15: memref<1x16x32xf32, #tpu.memory_space<vmem>>, %arg16: memref<16x32xf32, #tpu.memory_space<vmem>>) attributes {dimension_semantics = [#tpu.dimension_semantics<parallel>, #tpu.dimension_semantics<arbitrary>], iteration_bounds = array<i64: 1, 2>, scalar_prefetch = 0 : i64, scratch_operands = 1 : i64, tpu.core_type = #tpu.core_type<tc>, window_params = [{transform_indices = @transform_0, window_bounds = array<i64: 1, 16, 32>}, {transform_indices = @transform_1, window_bounds = array<i64: 1, 32, 96>}, {transform_indices = @transform_2, window_bounds = array<i64: 1, 1, 96>}, {transform_indices = @transform_3, window_bounds = array<i64: 1, 32, 32>}, {transform_indices = @transform_4, window_bounds = array<i64: 1, 1, 32>}, {transform_indices = @transform_5, window_bounds = array<i64: 1, 1, 32>}, {transform_indices = @transform_6, window_bounds = array<i64: 1, 1, 32>}, {transform_indices = @transform_7, window_bounds = array<i64: 1, 32, 64>}, {transform_indices = @transform_8, window_bounds = array<i64: 1, 1, 64>}, {transform_indices = @transform_9, window_bounds = array<i64: 1, 64, 32>}, {transform_indices = @transform_10, window_bounds = array<i64: 1, 1, 32>}, {transform_indices = @transform_11, window_bounds = array<i64: 1, 1, 32>}, {transform_indices = @transform_12, window_bounds = array<i64: 1, 1, 32>}, {transform_indices = @transform_13, window_bounds = array<i64: 1, 16, 32>}]} {
    %c0_i32 = arith.constant 0 : i32
    %0 = arith.cmpi eq, %arg1, %c0_i32 : i32
    %1 = arith.extui %0 : i1 to i32
    %c0_i32_0 = arith.constant 0 : i32
    %2 = arith.cmpi ne, %1, %c0_i32_0 : i32
    scf.if %2 {
      %c0_63 = arith.constant 0 : index
      %c0_64 = arith.constant 0 : index
      %c0_65 = arith.constant 0 : index
      %129 = vector.load %arg2[%c0_63, %c0_64, %c0_65] : memref<1x16x32xf32, #tpu.memory_space<vmem>>, vector<1x16x32xf32>
      %130 = vector.shape_cast %129 : vector<1x16x32xf32> to vector<16x32xf32>
      %c0_66 = arith.constant 0 : index
      %c0_67 = arith.constant 0 : index
      %131 = vector.load %arg16[%c0_66, %c0_67] : memref<16x32xf32, #tpu.memory_space<vmem>>, vector<16x32xf32>
      tpu.vector_store %arg16[%c0_66, %c0_67], %130 {strides = array<i32>} : memref<16x32xf32, #tpu.memory_space<vmem>>, vector<16x32xf32>,
    } else {
    }
    %c0 = arith.constant 0 : index
    %c0_1 = arith.constant 0 : index
    %3 = vector.load %arg16[%c0, %c0_1] : memref<16x32xf32, #tpu.memory_space<vmem>>, vector<16x32xf32>
    %c0_2 = arith.constant 0 : index
    %c0_3 = arith.constant 0 : index
    %c0_4 = arith.constant 0 : index
    %4 = vector.load %arg7[%c0_2, %c0_3, %c0_4] : memref<1x1x32xf32, #tpu.memory_space<vmem>>, vector<1x1x32xf32>
    %5 = vector.shape_cast %4 : vector<1x1x32xf32> to vector<1x32xf32>
    %c0_5 = arith.constant 0 : index
    %c0_6 = arith.constant 0 : index
    %c0_7 = arith.constant 0 : index
    %6 = vector.load %arg8[%c0_5, %c0_6, %c0_7] : memref<1x1x32xf32, #tpu.memory_space<vmem>>, vector<1x1x32xf32>
    %7 = vector.shape_cast %6 : vector<1x1x32xf32> to vector<1x32xf32>
    %cst = arith.constant dense<0.000000e+00> : vector<16xf32>
    %8 = vector.multi_reduction <add>, %3, %cst [1] : vector<16x32xf32> to vector<16xf32>
    %9 = vector.shape_cast %8 : vector<16xf32> to vector<16x1xf32>
    %cst_8 = arith.constant 3.200000e+01 : f32
    %10 = vector.broadcast %cst_8 : f32 to vector<16x1xf32>
    %11 = arith.divf %9, %10 : vector<16x1xf32>
    %12 = arith.mulf %3, %3 : vector<16x32xf32>
    %cst_9 = arith.constant dense<0.000000e+00> : vector<16xf32>
    %13 = vector.multi_reduction <add>, %12, %cst_9 [1] : vector<16x32xf32> to vector<16xf32>
    %14 = vector.shape_cast %13 : vector<16xf32> to vector<16x1xf32>
    %cst_10 = arith.constant 3.200000e+01 : f32
    %15 = vector.broadcast %cst_10 : f32 to vector<16x1xf32>
    %16 = arith.divf %14, %15 : vector<16x1xf32>
    %17 = arith.mulf %11, %11 : vector<16x1xf32>
    %18 = arith.subf %16, %17 : vector<16x1xf32>
    %cst_11 = arith.constant 0.000000e+00 : f32
    %19 = vector.broadcast %cst_11 : f32 to vector<16x1xf32>
    %20 = arith.maximumf %18, %19 : vector<16x1xf32>
    %21 = vector.broadcast %11 : vector<16x1xf32> to vector<16x32xf32>
    %22 = arith.subf %3, %21 : vector<16x32xf32>
    %cst_12 = arith.constant 9.99999997E-7 : f32
    %23 = vector.broadcast %cst_12 : f32 to vector<16x1xf32>
    %24 = arith.addf %20, %23 : vector<16x1xf32>
    %25 = math.rsqrt %24 : vector<16x1xf32>
    %26 = vector.broadcast %25 : vector<16x1xf32> to vector<16x32xf32>
    %27 = arith.mulf %22, %26 : vector<16x32xf32>
    %28 = vector.broadcast %5 : vector<1x32xf32> to vector<16x32xf32>
    %29 = arith.mulf %27, %28 : vector<16x32xf32>
    %30 = vector.broadcast %7 : vector<1x32xf32> to vector<16x32xf32>
    %31 = arith.addf %29, %30 : vector<16x32xf32>
    %c0_13 = arith.constant 0 : index
    %c0_14 = arith.constant 0 : index
    %c0_15 = arith.constant 0 : index
    %32 = vector.load %arg3[%c0_13, %c0_14, %c0_15] : memref<1x32x96xf32, #tpu.memory_space<vmem>>, vector<1x32x96xf32>
    %33 = vector.shape_cast %32 : vector<1x32x96xf32> to vector<32x96xf32>
    %cst_16 = arith.constant dense<0.000000e+00> : vector<16x96xf32>
    %34 = tpu.matmul %31, %33, %cst_16 {dimension_numbers = #tpu.dot_dimension_numbers<[1], [0], [0], [1], [0, 0, 1, 1], [], []>} : vector<16x32xf32>, vector<32x96xf32>, vector<16x96xf32> -> vector<16x96xf32>
    %c0_17 = arith.constant 0 : index
    %c0_18 = arith.constant 0 : index
    %c0_19 = arith.constant 0 : index
    %35 = vector.load %arg4[%c0_17, %c0_18, %c0_19] : memref<1x1x96xf32, #tpu.memory_space<vmem>>, vector<1x1x96xf32>
    %36 = vector.shape_cast %35 : vector<1x1x96xf32> to vector<1x96xf32>
    %37 = vector.broadcast %36 : vector<1x96xf32> to vector<16x96xf32>
    %38 = arith.addf %34, %37 : vector<16x96xf32>
    %39 = vector.extract_strided_slice %38 {offsets = [0, 0], sizes = [16, 32], strides = [1, 1]} : vector<16x96xf32> to vector<16x32xf32>
    %40 = vector.extract_strided_slice %38 {offsets = [0, 32], sizes = [16, 32], strides = [1, 1]} : vector<16x96xf32> to vector<16x32xf32>
    %41 = vector.extract_strided_slice %38 {offsets = [0, 64], sizes = [16, 32], strides = [1, 1]} : vector<16x96xf32> to vector<16x32xf32>
    %42 = vector.shape_cast %39 : vector<16x32xf32> to vector<2x8x4x8xf32>
    %43 = tpu.transpose %42, [0, 2, 1, 3] : vector<2x8x4x8xf32> -> vector<2x4x8x8xf32>
    %44 = vector.shape_cast %43 : vector<2x4x8x8xf32> to vector<8x8x8xf32>
    %45 = vector.shape_cast %40 : vector<16x32xf32> to vector<2x8x4x8xf32>
    %46 = tpu.transpose %45, [0, 2, 1, 3] : vector<2x8x4x8xf32> -> vector<2x4x8x8xf32>
    %47 = vector.shape_cast %46 : vector<2x4x8x8xf32> to vector<8x8x8xf32>
    %48 = vector.shape_cast %41 : vector<16x32xf32> to vector<2x8x4x8xf32>
    %49 = tpu.transpose %48, [0, 2, 1, 3] : vector<2x8x4x8xf32> -> vector<2x4x8x8xf32>
    %50 = vector.shape_cast %49 : vector<2x4x8x8xf32> to vector<8x8x8xf32>
    "tpu.trace_start"() <{level = 10 : i32, message = "bqd,bkd->bqk"}> : () -> ()
    %cst_20 = arith.constant dense<0.000000e+00> : vector<8x8x8xf32>
    %51 = tpu.matmul %44, %47, %cst_20 {dimension_numbers = #tpu.dot_dimension_numbers<[2], [2], [1], [1], [0, 0, 0, 1, 1, 1], [0], [0]>} : vector<8x8x8xf32>, vector<8x8x8xf32>, vector<8x8x8xf32> -> vector<8x8x8xf32>
    "tpu.trace_stop"() : () -> ()
    %cst_21 = arith.constant dense<0xFF800000> : vector<8x8xf32>
    %52 = vector.multi_reduction <maximumf>, %51, %cst_21 [2] : vector<8x8x8xf32> to vector<8x8xf32>
    %53 = vector.shape_cast %52 : vector<8x8xf32> to vector<8x8x1xf32>
    %54 = vector.broadcast %53 : vector<8x8x1xf32> to vector<8x8x8xf32>
    %55 = arith.subf %51, %54 : vector<8x8x8xf32>
    %56 = math.exp %55 : vector<8x8x8xf32>
    %cst_22 = arith.constant dense<0.000000e+00> : vector<8x8xf32>
    %57 = vector.multi_reduction <add>, %56, %cst_22 [2] : vector<8x8x8xf32> to vector<8x8xf32>
    %58 = vector.shape_cast %57 : vector<8x8xf32> to vector<8x8x1xf32>
    %59 = tpu.reciprocal %58 {approx = true} : vector<8x8x1xf32> -> vector<8x8x1xf32>
    %60 = vector.broadcast %59 : vector<8x8x1xf32> to vector<8x8x8xf32>
    %61 = arith.mulf %56, %60 : vector<8x8x8xf32>
    "tpu.trace_start"() <{level = 10 : i32, message = "bqk,bkd->bqd"}> : () -> ()
    %cst_23 = arith.constant dense<0.000000e+00> : vector<8x8x8xf32>
    %62 = tpu.matmul %61, %50, %cst_23 {dimension_numbers = #tpu.dot_dimension_numbers<[2], [1], [1], [2], [0, 0, 0, 1, 1, 2], [0], [0]>} : vector<8x8x8xf32>, vector<8x8x8xf32>, vector<8x8x8xf32> -> vector<8x8x8xf32>
    "tpu.trace_stop"() : () -> ()
    %63 = vector.shape_cast %62 : vector<8x8x8xf32> to vector<2x4x8x8xf32>
    %64 = tpu.transpose %63, [0, 2, 1, 3] : vector<2x4x8x8xf32> -> vector<2x8x4x8xf32>
    %65 = vector.shape_cast %64 : vector<2x8x4x8xf32> to vector<16x32xf32>
    %c0_24 = arith.constant 0 : index
    %c0_25 = arith.constant 0 : index
    %c0_26 = arith.constant 0 : index
    %66 = vector.load %arg5[%c0_24, %c0_25, %c0_26] : memref<1x32x32xf32, #tpu.memory_space<vmem>>, vector<1x32x32xf32>
    %67 = vector.shape_cast %66 : vector<1x32x32xf32> to vector<32x32xf32>
    %cst_27 = arith.constant dense<0.000000e+00> : vector<16x32xf32>
    %68 = tpu.matmul %65, %67, %cst_27 {dimension_numbers = #tpu.dot_dimension_numbers<[1], [0], [0], [1], [0, 0, 1, 1], [], []>} : vector<16x32xf32>, vector<32x32xf32>, vector<16x32xf32> -> vector<16x32xf32>
    %69 = arith.addf %3, %68 : vector<16x32xf32>
    %c0_28 = arith.constant 0 : index
    %c0_29 = arith.constant 0 : index
    %c0_30 = arith.constant 0 : index
    %70 = vector.load %arg6[%c0_28, %c0_29, %c0_30] : memref<1x1x32xf32, #tpu.memory_space<vmem>>, vector<1x1x32xf32>
    %71 = vector.shape_cast %70 : vector<1x1x32xf32> to vector<1x32xf32>
    %72 = vector.broadcast %71 : vector<1x32xf32> to vector<16x32xf32>
    %73 = arith.addf %69, %72 : vector<16x32xf32>
    %c0_31 = arith.constant 0 : index
    %c0_32 = arith.constant 0 : index
    %c0_33 = arith.constant 0 : index
    %74 = vector.load %arg13[%c0_31, %c0_32, %c0_33] : memref<1x1x32xf32, #tpu.memory_space<vmem>>, vector<1x1x32xf32>
    %75 = vector.shape_cast %74 : vector<1x1x32xf32> to vector<1x32xf32>
    %c0_34 = arith.constant 0 : index
    %c0_35 = arith.constant 0 : index
    %c0_36 = arith.constant 0 : index
    %76 = vector.load %arg14[%c0_34, %c0_35, %c0_36] : memref<1x1x32xf32, #tpu.memory_space<vmem>>, vector<1x1x32xf32>
    %77 = vector.shape_cast %76 : vector<1x1x32xf32> to vector<1x32xf32>
    %cst_37 = arith.constant dense<0.000000e+00> : vector<16xf32>
    %78 = vector.multi_reduction <add>, %73, %cst_37 [1] : vector<16x32xf32> to vector<16xf32>
    %79 = vector.shape_cast %78 : vector<16xf32> to vector<16x1xf32>
    %cst_38 = arith.constant 3.200000e+01 : f32
    %80 = vector.broadcast %cst_38 : f32 to vector<16x1xf32>
    %81 = arith.divf %79, %80 : vector<16x1xf32>
    %82 = arith.mulf %73, %73 : vector<16x32xf32>
    %cst_39 = arith.constant dense<0.000000e+00> : vector<16xf32>
    %83 = vector.multi_reduction <add>, %82, %cst_39 [1] : vector<16x32xf32> to vector<16xf32>
    %84 = vector.shape_cast %83 : vector<16xf32> to vector<16x1xf32>
    %cst_40 = arith.constant 3.200000e+01 : f32
    %85 = vector.broadcast %cst_40 : f32 to vector<16x1xf32>
    %86 = arith.divf %84, %85 : vector<16x1xf32>
    %87 = arith.mulf %81, %81 : vector<16x1xf32>
    %88 = arith.subf %86, %87 : vector<16x1xf32>
    %cst_41 = arith.constant 0.000000e+00 : f32
    %89 = vector.broadcast %cst_41 : f32 to vector<16x1xf32>
    %90 = arith.maximumf %88, %89 : vector<16x1xf32>
    %91 = vector.broadcast %81 : vector<16x1xf32> to vector<16x32xf32>
    %92 = arith.subf %73, %91 : vector<16x32xf32>
    %cst_42 = arith.constant 9.99999997E-7 : f32
    %93 = vector.broadcast %cst_42 : f32 to vector<16x1xf32>
    %94 = arith.addf %90, %93 : vector<16x1xf32>
    %95 = math.rsqrt %94 : vector<16x1xf32>
    %96 = vector.broadcast %95 : vector<16x1xf32> to vector<16x32xf32>
    %97 = arith.mulf %92, %96 : vector<16x32xf32>
    %98 = vector.broadcast %75 : vector<1x32xf32> to vector<16x32xf32>
    %99 = arith.mulf %97, %98 : vector<16x32xf32>
    %100 = vector.broadcast %77 : vector<1x32xf32> to vector<16x32xf32>
    %101 = arith.addf %99, %100 : vector<16x32xf32>
    %c0_43 = arith.constant 0 : index
    %c0_44 = arith.constant 0 : index
    %c0_45 = arith.constant 0 : index
    %102 = vector.load %arg9[%c0_43, %c0_44, %c0_45] : memref<1x32x64xf32, #tpu.memory_space<vmem>>, vector<1x32x64xf32>
    %103 = vector.shape_cast %102 : vector<1x32x64xf32> to vector<32x64xf32>
    %cst_46 = arith.constant dense<0.000000e+00> : vector<16x64xf32>
    %104 = tpu.matmul %101, %103, %cst_46 {dimension_numbers = #tpu.dot_dimension_numbers<[1], [0], [0], [1], [0, 0, 1, 1], [], []>} : vector<16x32xf32>, vector<32x64xf32>, vector<16x64xf32> -> vector<16x64xf32>
    %c0_47 = arith.constant 0 : index
    %c0_48 = arith.constant 0 : index
    %c0_49 = arith.constant 0 : index
    %105 = vector.load %arg10[%c0_47, %c0_48, %c0_49] : memref<1x1x64xf32, #tpu.memory_space<vmem>>, vector<1x1x64xf32>
    %106 = vector.shape_cast %105 : vector<1x1x64xf32> to vector<1x64xf32>
    %107 = vector.broadcast %106 : vector<1x64xf32> to vector<16x64xf32>
    %108 = arith.addf %104, %107 : vector<16x64xf32>
    %cst_50 = arith.constant 5.000000e-01 : f32
    %109 = vector.broadcast %cst_50 : f32 to vector<16x64xf32>
    %110 = arith.mulf %109, %108 : vector<16x64xf32>
    %cst_51 = arith.constant 0.707106769 : f32
    %111 = vector.broadcast %cst_51 : f32 to vector<16x64xf32>
    %112 = arith.mulf %108, %111 : vector<16x64xf32>
    %113 = math.erf %112 : vector<16x64xf32>
    %cst_52 = arith.constant 1.000000e+00 : f32
    %114 = vector.broadcast %cst_52 : f32 to vector<16x64xf32>
    %115 = arith.addf %114, %113 : vector<16x64xf32>
    %116 = arith.mulf %110, %115 : vector<16x64xf32>
    %c0_53 = arith.constant 0 : index
    %c0_54 = arith.constant 0 : index
    %c0_55 = arith.constant 0 : index
    %117 = vector.load %arg11[%c0_53, %c0_54, %c0_55] : memref<1x64x32xf32, #tpu.memory_space<vmem>>, vector<1x64x32xf32>
    %118 = vector.shape_cast %117 : vector<1x64x32xf32> to vector<64x32xf32>
    %cst_56 = arith.constant dense<0.000000e+00> : vector<16x32xf32>
    %119 = tpu.matmul %116, %118, %cst_56 {dimension_numbers = #tpu.dot_dimension_numbers<[1], [0], [0], [1], [0, 0, 1, 1], [], []>} : vector<16x64xf32>, vector<64x32xf32>, vector<16x32xf32> -> vector<16x32xf32>
    %c0_57 = arith.constant 0 : index
    %c0_58 = arith.constant 0 : index
    %c0_59 = arith.constant 0 : index
    %120 = vector.load %arg12[%c0_57, %c0_58, %c0_59] : memref<1x1x32xf32, #tpu.memory_space<vmem>>, vector<1x1x32xf32>
    %121 = vector.shape_cast %120 : vector<1x1x32xf32> to vector<1x32xf32>
    %122 = vector.broadcast %121 : vector<1x32xf32> to vector<16x32xf32>
    %123 = arith.addf %119, %122 : vector<16x32xf32>
    %124 = arith.addf %73, %123 : vector<16x32xf32>
    %c0_60 = arith.constant 0 : index
    %c0_61 = arith.constant 0 : index
    %125 = vector.load %arg16[%c0_60, %c0_61] : memref<16x32xf32, #tpu.memory_space<vmem>>, vector<16x32xf32>
    tpu.vector_store %arg16[%c0_60, %c0_61], %124 {strides = array<i32>} : memref<16x32xf32, #tpu.memory_space<vmem>>, vector<16x32xf32>,
    %c1_i32 = arith.constant 1 : i32
    %126 = arith.cmpi eq, %arg1, %c1_i32 : i32
    %127 = arith.extui %126 : i1 to i32
    %c0_i32_62 = arith.constant 0 : i32
    %128 = arith.cmpi ne, %127, %c0_i32_62 : i32
    scf.if %128 {
      %c0_63 = arith.constant 0 : index
      %c0_64 = arith.constant 0 : index
      %129 = vector.load %arg16[%c0_63, %c0_64] : memref<16x32xf32, #tpu.memory_space<vmem>>, vector<16x32xf32>
      %c0_65 = arith.constant 0 : index
      %c0_66 = arith.constant 0 : index
      %c0_67 = arith.constant 0 : index
      %130 = vector.load %arg15[%c0_65, %c0_66, %c0_67] : memref<1x16x32xf32, #tpu.memory_space<vmem>>, vector<1x16x32xf32>
      %131 = vector.shape_cast %130 : vector<1x16x32xf32> to vector<16x32xf32>
      %132 = vector.shape_cast %129 : vector<16x32xf32> to vector<1x16x32xf32>
      tpu.vector_store %arg15[%c0_65, %c0_66, %c0_67], %132 {strides = array<i32>} : memref<1x16x32xf32, #tpu.memory_space<vmem>>, vector<1x16x32xf32>,
    } else {
    }
    return
  }
  func.func @transform_0(%arg0: i32, %arg1: i32) -> (i32, i32, i32) {
    %c0_i32 = arith.constant 0 : i32
    %c0_i32_0 = arith.constant 0 : i32
    %c0_i32_1 = arith.constant 0 : i32
    return %arg0, %c0_i32, %c0_i32_0 : i32, i32, i32
  }
  func.func @transform_1(%arg0: i32, %arg1: i32) -> (i32, i32, i32) {
    %c0_i32 = arith.constant 0 : i32
    %c0_i32_0 = arith.constant 0 : i32
    %c0_i32_1 = arith.constant 0 : i32
    return %arg1, %c0_i32, %c0_i32_0 : i32, i32, i32
  }
  func.func @transform_2(%arg0: i32, %arg1: i32) -> (i32, i32, i32) {
    %c0_i32 = arith.constant 0 : i32
    %c0_i32_0 = arith.constant 0 : i32
    %c0_i32_1 = arith.constant 0 : i32
    return %arg1, %c0_i32, %c0_i32_0 : i32, i32, i32
  }
  func.func @transform_3(%arg0: i32, %arg1: i32) -> (i32, i32, i32) {
    %c0_i32 = arith.constant 0 : i32
    %c0_i32_0 = arith.constant 0 : i32
    %c0_i32_1 = arith.constant 0 : i32
    return %arg1, %c0_i32, %c0_i32_0 : i32, i32, i32
  }
  func.func @transform_4(%arg0: i32, %arg1: i32) -> (i32, i32, i32) {
    %c0_i32 = arith.constant 0 : i32
    %c0_i32_0 = arith.constant 0 : i32
    %c0_i32_1 = arith.constant 0 : i32
    return %arg1, %c0_i32, %c0_i32_0 : i32, i32, i32
  }
  func.func @transform_5(%arg0: i32, %arg1: i32) -> (i32, i32, i32) {
    %c0_i32 = arith.constant 0 : i32
    %c0_i32_0 = arith.constant 0 : i32
    %c0_i32_1 = arith.constant 0 : i32
    return %arg1, %c0_i32, %c0_i32_0 : i32, i32, i32
  }
  func.func @transform_6(%arg0: i32, %arg1: i32) -> (i32, i32, i32) {
    %c0_i32 = arith.constant 0 : i32
    %c0_i32_0 = arith.constant 0 : i32
    %c0_i32_1 = arith.constant 0 : i32
    return %arg1, %c0_i32, %c0_i32_0 : i32, i32, i32
  }
  func.func @transform_7(%arg0: i32, %arg1: i32) -> (i32, i32, i32) {
    %c0_i32 = arith.constant 0 : i32
    %c0_i32_0 = arith.constant 0 : i32
    %c0_i32_1 = arith.constant 0 : i32
    return %arg1, %c0_i32, %c0_i32_0 : i32, i32, i32
  }
  func.func @transform_8(%arg0: i32, %arg1: i32) -> (i32, i32, i32) {
    %c0_i32 = arith.constant 0 : i32
    %c0_i32_0 = arith.constant 0 : i32
    %c0_i32_1 = arith.constant 0 : i32
    return %arg1, %c0_i32, %c0_i32_0 : i32, i32, i32
  }
  func.func @transform_9(%arg0: i32, %arg1: i32) -> (i32, i32, i32) {
    %c0_i32 = arith.constant 0 : i32
    %c0_i32_0 = arith.constant 0 : i32
    %c0_i32_1 = arith.constant 0 : i32
    return %arg1, %c0_i32, %c0_i32_0 : i32, i32, i32
  }
  func.func @transform_10(%arg0: i32, %arg1: i32) -> (i32, i32, i32) {
    %c0_i32 = arith.constant 0 : i32
    %c0_i32_0 = arith.constant 0 : i32
    %c0_i32_1 = arith.constant 0 : i32
    return %arg1, %c0_i32, %c0_i32_0 : i32, i32, i32
  }
  func.func @transform_11(%arg0: i32, %arg1: i32) -> (i32, i32, i32) {
    %c0_i32 = arith.constant 0 : i32
    %c0_i32_0 = arith.constant 0 : i32
    %c0_i32_1 = arith.constant 0 : i32
    return %arg1, %c0_i32, %c0_i32_0 : i32, i32, i32
  }
  func.func @transform_12(%arg0: i32, %arg1: i32) -> (i32, i32, i32) {
    %c0_i32 = arith.constant 0 : i32
    %c0_i32_0 = arith.constant 0 : i32
    %c0_i32_1 = arith.constant 0 : i32
    return %arg1, %c0_i32, %c0_i32_0 : i32, i32, i32
  }
  func.func @transform_13(%arg0: i32, %arg1: i32) -> (i32, i32, i32) {
    %c0_i32 = arith.constant 0 : i32
    %c0_i32_0 = arith.constant 0 : i32
    %c0_i32_1 = arith.constant 0 : i32
    return %arg0, %c0_i32, %c0_i32_0 : i32, i32, i32
  }
}

</mosaic_0001>

<bundles_post_ra>
// kernel: tpu_custom_call.1
= control target key start
LH: loop header
LB: loop body
LE: loop exit
PB: predicated region body
PF: predicated region fallthrough
CT: control target
= control target key end

     0   :  { %s4940_s0 = inlined_call_operand.hbm [shape: f32[1,16,32], index: 0, kind: input, shape index: {}]   ;;  %s4941_s1 = inlined_call_operand.vmem [shape: f32[2,32,96], index: 1, kind: input, shape index: {}]   ;;  %s4942_s2 = inlined_call_operand.vmem [shape: f32[2,1,96], index: 2, kind: input, shape index: {}]   ;;  %s4943_s3 = inlined_call_operand.vmem [shape: f32[2,32,32], index: 3, kind: input, shape index: {}]   ;;  %s4944_s4 = inlined_call_operand.vmem [shape: f32[2,1,32], index: 4, kind: input, shape index: {}]   ;;  %s4945_s5 = inlined_call_operand.vmem [shape: f32[2,1,32], index: 5, kind: input, shape index: {}]   ;;  %s4946_s6 = inlined_call_operand.vmem [shape: f32[2,1,32], index: 6, kind: input, shape index: {}]   ;;  %s4947_s7 = inlined_call_operand.vmem [shape: f32[2,32,64], index: 7, kind: input, shape index: {}]   ;;  %s4948_s8 = inlined_call_operand.vmem [shape: f32[2,1,64], index: 8, kind: input, shape index: {}]   ;;  %s4949_s9 = inlined_call_operand.vmem [shape: f32[2,64,32], index: 9, kind: input, shape index: {}]   ;;  %s4950_s10 = inlined_call_operand.vmem [shape: f32[2,1,32], index: 10, kind: input, shape index: {}]   ;;  %s4951_s11 = inlined_call_operand.vmem [shape: f32[2,1,32], index: 11, kind: input, shape index: {}]   ;;  %s4952_s12 = inlined_call_operand.vmem [shape: f32[2,1,32], index: 12, kind: input, shape index: {}]   ;;  %s4953_s13 = inlined_call_operand.hbm [shape: f32[1,16,32], index: 13, kind: output, shape index: {}]  }
   0x1   :  { %4957 = sst [smem:[#allocation12_spill]] %s4940_s0 }
   0x2   :  { %4958 = sst [smem:[#allocation13_spill]] %s4941_s1 }
   0x3   :  { %4959 = sst [smem:[#allocation14_spill]] %s4943_s3 }
   0x4   :  { %4960 = sst [smem:[#allocation15_spill]] %s4953_s13 }
   0x5   :  { %18 = vsyncpa [#allocation4], 0 }
   0x6   :  { %19 = vsyncpa [#allocation5], 0  ;;  %s4348_s25 = smov 0   ;;  %s4350_s26 = smov 0  }
   0x7   :  { %s4352_s27 = smov 0  }
   0x8 LB: > { %4961 = sst [smem:[#allocation9_spill]] %s4255_s26  ;;  %s4954_s28 = sadd.s32 4294967295, %s4259_s27   ;;  %s4259_s27 = sphi %s4352_s27, %s25_s27   ;;  %s4255_s26 = sphi %s4350_s26, %s4979_s26   ;;  %s4251_s25 = sphi %s4348_s25, %s4978_s25  }
   0x9   : > { %4962 = sst [smem:[#allocation10_spill]] %s4259_s27  ;;  %s34_s29 = sadd.s32 1, %s4255_s26 }
   0xa   : > { %p35_p0 = scmp.ge.s32.totalorder %s34_s29, 2  ;;  %p3805_p1 = scmp.ge.s32.totalorder %s4259_s27, 1 }
   0xb   : > { %p406_p2 = scmp.lt.s32.totalorder %s4259_s27, 3  ;;  %p4375_p4 = scmp.eq.s32.totalorder %s4954_s28, 0 }
   0xc   : > { %s4981_s29 = smov (%p35_p0, %s34_s29), 0  ;;  %s4261_s15 = smov [#allocation3]  }
   0xd   : > { %4963 = sst [smem:[#allocation11_spill]] %s4981_s29  ;;  %p4369_p3 = pnand %p3805_p1, %p406_p2 }
   0xe   : > { %s421_s16 = sshll.u32 %s4261_s15, 4  ;;  %s422_s16 = int_to_ptr.vmem [resolvable:$true] %s421_s16 }
   0xf   : > { %p4084_p5 = pneg %p4369_p3  ;;  %s4190_s17 = scalar_lea.vmem %s422_s16, 256 }
  0x10   : > { %p4191_p8 = scmp.ne.s32.totalorder %s422_s16, %s4190_s17  ;;  %p4198_p11 = scmp.lt.s32.totalorder %s422_s16, %s422_s16 }
  0x11   : > { %p4085_p6 = pnand %p4375_p4, %p4084_p5  ;;  %p4199_p12 = scmp.lt.s32.totalorder %s4190_s17, %s4190_s17 }
  0x13   : > { %p4181_p7 = pneg %p4085_p6  ;;  %p4200_p13 = por %p4199_p12, %p4198_p11 }
  0x15   : > { %p4193_p9 = pnand %p4191_p8, %p4181_p7 }
  0x17   : > { %p4194_p10 = pneg %p4193_p9 }
  0x19   : > { %p4201_p0 = pnand %p4200_p13, %p4194_p10 }
  0x1b   : > { %4204 = shalt.err (!%p4201_p0)
}
  0x1c   : > { %s4262_s18 = smov 128   ;;  %s4263_s19 = smov 8  }
  0x1d   : > { %s4966_s0 = sld [smem:[#allocation12_spill]] }
  0x1f   : > { %517 = sbr.rel (%p4369_p3) target bundleno = 2430 (0x97e), region = 72 }
  0x23   : > { %4087 = dma.hbm_to_vmem [thread:$0]  (!%p4085_p6), %s4966_s0, 256, %s422_s16, [#allocation4], %s4262_s18, %s4262_s18, %s4263_s19  }
  0x24   : > { %4242 = dma.done.wait (%p4375_p4), [#allocation4], 256  }
  0x25   : > { %4244 = vsyncadd (%p4375_p4), [#allocation4], 4294967040  ;;  %p595_p1 = scmp.lt.s32.totalorder %s4251_s25, 1  ;;  %s4967_s1 = sld [smem:[#allocation13_spill]] }
  0x26   : > { %s4968_s3 = sld [smem:[#allocation14_spill]]  ;;  %p3818_p2 = scmp.ne.s32.totalorder %s4251_s25, 0 }
  0x27   : > { %s4394_s22 = scalar_select %p595_p1, %s4251_s25, 1 }
  0x29   : > { %s3880_s23 = sshll.u32 %s4394_s22, 5  ;;  %s3883_s27 = sshll.u32 %s4394_s22, 6 }
  0x2a   : > { %s4436_s0 = scalar_lea.vmem %s4949_s9, %s3883_s27  ;;  %s632_s24 = scalar_lea.vmem %s4950_s10, %s4394_s22 }
  0x2b   : > { %s4404_s17 = scalar_lea.vmem %s4967_s1, %s3880_s23  ;;  %s4426_s1 = scalar_lea.vmem %s4947_s7, %s3880_s23 }
  0x2c   : > { %s4409_s20 = scalar_lea.vmem %s4968_s3, %s3880_s23  ;;  %s624_s3 = scalar_lea.vmem %s4948_s8, %s4394_s22 }
  0x2d   : > { %s635_s15 = scalar_lea.vmem %s4951_s11, %s4394_s22  ;;  %s638_s13 = scalar_lea.vmem %s4952_s12, %s4394_s22 }
  0x2e   : > { %642 = sbr.rel (%p3818_p2) target bundleno = 53 (0x35), region = 80 }
  0x33   : > { %v643_v0 = vld [vmem:[#allocation3] sm:$0xff]  ;;  %vm645_vm0 = vcmask 261120   ;;  %v644_v1 = vld [vmem:[#allocation3 + $0x8] sm:$0xff] }
  0x34   : > { %646 = vst.msk [vmem:[#allocation2] sm:$0xff] %vm645_vm0, %v643_v0  ;;  %647 = vst.msk [vmem:[#allocation2 + $0x8] sm:$0xff] %vm645_vm0, %v644_v1 }
  0x35 PF: > { %vm652_vm1 = vcmask 261120   ;;  %v705_v10 = vld [vmem:[%s4404_s17 + $0x18] sm:$0xff]  ;;  %v704_v11 = vld [vmem:[%s4404_s17 + $0x10] sm:$0xff]  ;;  %v703_v12 = vld [vmem:[%s4404_s17 + $0x8] sm:$0xff]  ;;  %s4970_s28 = scalar_lea.vmem %s4946_s6, %s4394_s22  ;;  %s4971_s29 = scalar_lea.vmem %s4942_s2, %s4394_s22  ;;  %v4268_v52 = vmov 0.0   ;;  %vm4269_vm2 = vmmov 0   ;;  %v819_v56 = vlaneseq }
  0x36   : > { %3944 = vmatprep.subr.mxu1 %v705_v10  ;;  %v702_v13 = vld [vmem:[%s4404_s17] sm:$0xff]  ;;  %s4969_s17 = scalar_lea.vmem %s4945_s5, %s4394_s22  ;;  %s4264_s30 = smov 112   ;;  %3965 = vmatprep.subr.mxu0 %v4268_v52  ;;  %v4270_v54 = vmov 1983009808   ;;  %v4271_v59 = vmov 1934713408  }
  0x37   : > { %3945 = vmatpush3.msra.mxu1 %v705_v10  ;;  %v3819_v32 = vld [vmem:[%s4969_s17] ss:$0 sm:$0xff]  ;;  %s4265_s23 = smov 120   ;;  %s4266_s16 = smov 104   ;;  %3967 = vmatprep.mubr.msk.f32.mxu0 %vm4269_vm2, %v4268_v52  ;;  %v817_v55 = vunpack.c.l.s4 %v4270_v54  ;;  %v820_v58 = vshrl.u32 %v819_v56, 7  ;;  %v849_v60 = vunpack.c.l.s4 %v4271_v59  ;;  %vm1678_vm3 = vcmask 64512  }
  0x38   : > { %3946 = vmatprep.subr.mxu1 %v704_v11  ;;  %v3820_v34 = vld [vmem:[%s4970_s28] ss:$0 sm:$0xff]  ;;  %s4267_s27 = smov 96   ;;  %s4272_s14 = smov 64   ;;  %vm3257_vm4 = vcmask 130048   ;;  %vm3260_vm5 = vcmask 195584  }
  0x39   : > { %3947 = vmatpush3.msra.mxu1 %v704_v11  ;;  %v3821_v43 = vld [vmem:[%s4971_s29] ss:$0 sm:$0xff]  ;;  %v818_v57 = vunpack.c.0.s8 %v817_v55  ;;  %s4273_s17 = smov 8   ;;  %s4274_s18 = smov 16   ;;  %vm3526_vm6 = vcmask 523264  }
  0x3a   : > { %3948 = vmatprep.subr.mxu1 %v703_v12  ;;  %s4275_s19 = smov 24   ;;  %s4972_s21 = scalar_lea.vmem %s4944_s4, %s4394_s22 }
  0x3b   : > { %v648_v2 = vld [vmem:[#allocation2] sm:$0xff]  ;;  %v649_v3 = vld [vmem:[#allocation2 + $0x8] sm:$0xff]  ;;  %3949 = vmatpush3.msra.mxu1 %v703_v12  ;;  %v4516_v63 = vsub.s32 %v818_v57, %v820_v58  ;;  %p3875_p3 = scmp.ne.s32.totalorder %s4251_s25, 1 }
  0x3c   : > { %v653_v4 = vsel %vm652_vm1, %v648_v2, 0.0  ;;  %v662_v5 = vmul.f32 %v648_v2, %v648_v2  ;;  %v663_v6 = vmul.f32 %v649_v3, %v649_v3  ;;  %v656_v8 = vsel %vm652_vm1, %v649_v3, 0.0  ;;  %3950 = vmatprep.subr.mxu1 %v702_v13 }
  0x3d   : > { %654 = vadd.xlane.f32.xlu0 %v653_v4  ;;  %3951 = vmatpush3.msra.mxu1 %v702_v13 }
  0x3e   : > { %v664_v7 = vsel %vm652_vm1, %v662_v5, 0.0  ;;  %v667_v9 = vsel %vm652_vm1, %v663_v6, 0.0  ;;  %3955 = vmatprep.subr.mxu1 %v4268_v52 }
  0x3f   : > { %665 = vadd.xlane.f32.xlu1 %v664_v7 }
  0x41   : > { %657 = vadd.xlane.f32.xlu0 %v656_v8 }
  0x43   : > { %668 = vadd.xlane.f32.xlu1 %v667_v9 }
  0xc6   : > { %v655_v14 = vpop.xlane.xlu0 %654 }
  0xc7   : > { %v660_v15 = vmul.f32 0.03125, %v655_v14 }
  0xc8   : > { %v666_v16 = vpop.xlane.xlu1 %665 }
  0xc9   : > { %v672_v17 = vmul.f32 %v660_v15, %v660_v15  ;;  %v670_v18 = vmul.f32 0.03125, %v666_v16  ;;  %v678_v30 = vsub.f32 %v648_v2, %v660_v15  ;;  %v850_v2 = vunpack.c.0.s8 %v849_v60 }
  0xca   : > { %v658_v19 = vpop.xlane.xlu0 %657 }
  0xcb   : > { %v674_v20 = vsub.f32 %v670_v18, %v672_v17  ;;  %v661_v21 = vmul.f32 0.03125, %v658_v19  ;;  %v4526_v7 = vsub.s32 %v850_v2, %v820_v58 }
  0xcc   : > { %v669_v22 = vpop.xlane.xlu1 %668 }
  0xcd   : > { %v676_v23 = vmax.f32 %v674_v20, 0.0  ;;  %v673_v24 = vmul.f32 %v661_v21, %v661_v21  ;;  %v671_v25 = vmul.f32 0.03125, %v669_v22  ;;  %v679_v35 = vsub.f32 %v649_v3, %v661_v21 }
  0xcf   : > { %v680_v26 = vadd.f32 1e-06, %v676_v23  ;;  %v675_v27 = vsub.f32 %v671_v25, %v673_v24 }
  0xd1   : > { %4133 = vrsqrt.f32 %v680_v26  ;;  %v677_v28 = vmax.f32 %v675_v27, 0.0 }
  0xd3   : > { %v681_v29 = vadd.f32 1e-06, %v677_v28 }
  0xd5   : > { %4135 = vrsqrt.f32 %v681_v29 }
  0xde   : > { %v4134_v31 = vpop.eup %4133 }
  0xdf   : > { %v684_v33 = vmul.f32 %v4134_v31, %v678_v30 }
  0xe1   : > { %v692_v36 = vmul.f32 %v3819_v32, %v684_v33 }
  0xe2   : > { %v4136_v37 = vpop.eup %4135 }
  0xe3   : > { %v685_v38 = vmul.f32 %v4136_v37, %v679_v35  ;;  %v700_v39 = vadd.f32 %v3820_v34, %v692_v36 }
  0xe5   : > { %v693_v40 = vmul.f32 %v3819_v32, %v685_v38  ;;  %3952 = vmatprep.mubr.msk.f32.mxu1 %vm652_vm1, %v700_v39 }
  0xe7   : > { %v701_v41 = vadd.f32 %v3820_v34, %v693_v40 }
  0xe9   : > { %3953 = vmatmul.mubr.msk.f32.vlgmr.msra.gmra.mxu1 %vm652_vm1, %v701_v41 }
  0xea   : > { %3957 = vmatprep.mubr.msk.f32.mxu1 %vm4269_vm2, %v4268_v52 }
 0x1a9   : > { %v3954_v42 = vpop.f32.mrf.mxu1 }
 0x1aa   : > { %v4480_v46 = vadd.f32 %v3954_v42, %v3821_v43 }
 0x1ab   : > { %v785_v44 = vpop.f32.mrf.mxu1 }
 0x1ac   : > { %v4476_v45 = vadd.f32 %v3821_v43, %v785_v44 }
 0x1ae   : > { %802 = vrot.lane.b32.xlu1 %v4476_v45, %s4264_s30  ;;  %796 = vrot.lane.b32.xlu0 %v4476_v45, %s4265_s23 }
 0x1b2   : > { %808 = vrot.lane.b32.xlu1 %v4476_v45, %s4266_s16  ;;  %804 = vrot.lane.b32.xlu0 %v4480_v46, %s4264_s30 }
 0x1b6   : > { %798 = vrot.lane.b32.xlu1 %v4480_v46, %s4265_s23  ;;  %1086 = vrot.lane.b32.xlu0 %v4476_v45, %s4267_s27 }
 0x1ba   : > { %810 = vrot.lane.b32.xlu1 %v4480_v46, %s4266_s16 }
 0x220   : > { %v4487_v47 = vpop.permute.xlu1 %802  ;;  %v4489_v48 = vpop.permute.xlu0 %796 }
 0x221   : > { %1094 = vrot.lane.b32.xlu0 %v4487_v47, %s4267_s27  ;;  %1090 = vrot.lane.b32.xlu1 %v4489_v48, %s4267_s27  ;;  %v814_v0 = vcombine.low %v4476_v45, %v4487_v47  ;;  %v815_v1 = vcombine.high %v4476_v45, %v4487_v47 }
 0x223   : > { %v822_v5 = vrot.slane %v814_v0, %v4516_v63  ;;  %v829_v6 = vrot.slane %v815_v1, %v4516_v63 }
 0x224   : > { %v4493_v49 = vpop.permute.xlu1 %808  ;;  %v4497_v50 = vpop.permute.xlu0 %804 }
 0x225   : > { %1088 = vrot.lane.b32.xlu0 %v4480_v46, %s4267_s27  ;;  %1098 = vrot.lane.b32.xlu1 %v4493_v49, %s4267_s27  ;;  %v830_v61 = vcombine.low %v4489_v48, %v4493_v49  ;;  %v831_v62 = vcombine.high %v4489_v48, %v4493_v49  ;;  %v882_v18 = vcombine.low %v4480_v46, %v4497_v50 }
 0x226   : > { %v883_v24 = vcombine.high %v4480_v46, %v4497_v50 }
 0x227   : > { %v838_v3 = vrot.slane %v830_v61, %v4516_v63  ;;  %v845_v4 = vrot.slane %v831_v62, %v4516_v63  ;;  %v890_v27 = vrot.slane %v882_v18, %v4516_v63 }
 0x228   : > { %v4499_v51 = vpop.permute.xlu1 %798  ;;  %v1087_v19 = vpop.permute.xlu0 %1086  ;;  %v897_v34 = vrot.slane %v883_v24, %v4516_v63 }
 0x229   : > { %1096 = vrot.lane.b32.xlu0 %v4497_v50, %s4267_s27  ;;  %1092 = vrot.lane.b32.xlu1 %v4499_v51, %s4267_s27  ;;  %v846_v8 = vcombine.low %v822_v5, %v838_v3  ;;  %v847_v9 = vcombine.high %v822_v5, %v838_v3  ;;  %v862_v10 = vcombine.low %v829_v6, %v845_v4 }
 0x22a   : > { %v863_v11 = vcombine.high %v829_v6, %v845_v4 }
 0x22b   : > { %v854_v12 = vrot.slane %v846_v8, %v4526_v7  ;;  %v861_v13 = vrot.slane %v847_v9, %v4526_v7  ;;  %v870_v14 = vrot.slane %v862_v10, %v4526_v7 }
 0x22c   : > { %v4504_v53 = vpop.permute.xlu1 %810  ;;  %v877_v15 = vrot.slane %v863_v11, %v4526_v7 }
 0x22d   : > { %1100 = vrot.lane.b32.xlu1 %v4504_v53, %s4267_s27  ;;  %v898_v16 = vcombine.low %v4499_v51, %v4504_v53  ;;  %v950_v17 = vcombine.low %v854_v12, %v861_v13  ;;  %v3824_v20 = vcombine.high %v854_v12, %v861_v13  ;;  %v899_v23 = vcombine.high %v4499_v51, %v4504_v53 }
 0x22e   : > { %v966_v21 = vcombine.low %v870_v14, %v877_v15  ;;  %v3825_v22 = vcombine.high %v870_v14, %v877_v15 }
 0x22f   : > { %v906_v25 = vrot.slane %v898_v16, %v4516_v63  ;;  %v957_v26 = vrot.slane %v950_v17, %v4516_v63  ;;  %v965_v30 = vrot.slane %v3824_v20, %v4516_v63  ;;  %v913_v33 = vrot.slane %v899_v23, %v4516_v63 }
 0x230   : > { %v973_v31 = vrot.slane %v966_v21, %v4516_v63  ;;  %v981_v32 = vrot.slane %v3825_v22, %v4516_v63 }
 0x231   : > { %v914_v35 = vcombine.low %v890_v27, %v906_v25  ;;  %v915_v36 = vcombine.high %v890_v27, %v906_v25  ;;  %v930_v40 = vcombine.low %v897_v34, %v913_v33  ;;  %v931_v41 = vcombine.high %v897_v34, %v913_v33 }
 0x232   : > { %v982_v43 = vcombine.low %v957_v26, %v965_v30  ;;  %v998_v44 = vcombine.low %v973_v31, %v981_v32  ;;  %v983_v58 = vcombine.high %v957_v26, %v965_v30  ;;  %v999_v59 = vcombine.high %v973_v31, %v981_v32 }
 0x233   : > { %v922_v56 = vrot.slane %v914_v35, %v4526_v7  ;;  %v929_v57 = vrot.slane %v915_v36, %v4526_v7  ;;  %v938_v1 = vrot.slane %v930_v40, %v4526_v7  ;;  %v945_v2 = vrot.slane %v931_v41, %v4526_v7 }
 0x234   : > { %v4557_v4 = vrot.slane %v982_v43, %v4526_v7  ;;  %v4560_v5 = vrot.slane %v998_v44, %v4526_v7  ;;  %v4563_v14 = vrot.slane %v983_v58, %v4526_v7  ;;  %v4566_v15 = vrot.slane %v999_v59, %v4526_v7 }
 0x235   : > { %v1018_v12 = vcombine.low %v922_v56, %v929_v57  ;;  %v3826_v13 = vcombine.high %v922_v56, %v929_v57  ;;  %v1034_v20 = vcombine.low %v938_v1, %v945_v2  ;;  %v3827_v21 = vcombine.high %v938_v1, %v945_v2 }
 0x237   : > { %v4576_v30 = vrot.slane %v3826_v13, %v4516_v63 }
 0x293   : > { %v1091_v28 = vpop.permute.xlu1 %1090  ;;  %v1095_v29 = vpop.permute.xlu0 %1094 }
 0x294   : > { %v1110_v37 = vcombine.low %v1087_v19, %v1095_v29  ;;  %v1111_v38 = vcombine.high %v1087_v19, %v1095_v29  ;;  %v4573_v29 = vrot.slane %v1018_v12, %v4516_v63 }
 0x296   : > { %v1118_v60 = vrot.slane %v1110_v37, %v4516_v63  ;;  %v1125_v61 = vrot.slane %v1111_v38, %v4516_v63 }
 0x297   : > { %v1089_v39 = vpop.permute.xlu0 %1088  ;;  %v1099_v42 = vpop.permute.xlu1 %1098 }
 0x298   : > { %v1126_v54 = vcombine.low %v1091_v28, %v1099_v42  ;;  %v1127_v55 = vcombine.high %v1091_v28, %v1099_v42 }
 0x29a   : > { %v1134_v62 = vrot.slane %v1126_v54, %v4516_v63  ;;  %v1141_v0 = vrot.slane %v1127_v55, %v4516_v63 }
 0x29b   : > { %v1093_v3 = vpop.permute.xlu1 %1092  ;;  %v1097_v11 = vpop.permute.xlu0 %1096 }
 0x29c   : > { %v1142_v6 = vcombine.low %v1118_v60, %v1134_v62  ;;  %v1143_v8 = vcombine.high %v1118_v60, %v1134_v62  ;;  %v1158_v9 = vcombine.low %v1125_v61, %v1141_v0  ;;  %v1159_v10 = vcombine.high %v1125_v61, %v1141_v0 }
 0x29d   : > { %v1178_v22 = vcombine.low %v1089_v39, %v1097_v11  ;;  %v1179_v23 = vcombine.high %v1089_v39, %v1097_v11 }
 0x29e   : > { %v1150_v16 = vrot.slane %v1142_v6, %v4526_v7  ;;  %v1157_v17 = vrot.slane %v1143_v8, %v4526_v7  ;;  %v1166_v18 = vrot.slane %v1158_v9, %v4526_v7  ;;  %v1173_v19 = vrot.slane %v1159_v10, %v4526_v7 }
 0x29f   : > { %v1101_v24 = vpop.permute.xlu1 %1100  ;;  %v1186_v37 = vrot.slane %v1178_v22, %v4516_v63  ;;  %v1193_v38 = vrot.slane %v1179_v23, %v4516_v63  ;;  %v1049_v6 = vrot.slane %v3827_v21, %v4516_v63  ;;  %v1016_v21 = vcombine.low %v4563_v14, %v4566_v15 }
 0x2a0   : > { %v1246_v25 = vcombine.low %v1150_v16, %v1157_v17  ;;  %v3828_v26 = vcombine.high %v1150_v16, %v1157_v17  ;;  %v1262_v27 = vcombine.low %v1166_v18, %v1173_v19  ;;  %v3829_v28 = vcombine.high %v1166_v18, %v1173_v19 }
 0x2a1   : > { %v1194_v31 = vcombine.low %v1093_v3, %v1101_v24  ;;  %v1195_v32 = vcombine.high %v1093_v3, %v1101_v24  ;;  %v1041_v3 = vrot.slane %v1034_v20, %v4516_v63  ;;  %v1014_v16 = vcombine.low %v4557_v4, %v4560_v5 }
 0x2a2   : > { %v1253_v33 = vrot.slane %v1246_v25, %v4516_v63  ;;  %v1261_v34 = vrot.slane %v3828_v26, %v4516_v63  ;;  %v1269_v35 = vrot.slane %v1262_v27, %v4516_v63  ;;  %v1277_v36 = vrot.slane %v3829_v28, %v4516_v63 }
 0x2a3   : > { %v1202_v39 = vrot.slane %v1194_v31, %v4516_v63  ;;  %v1209_v40 = vrot.slane %v1195_v32, %v4516_v63  ;;  %v1050_v23 = vcombine.low %v4573_v29, %v4576_v30  ;;  %v1066_v24 = vcombine.low %v1041_v3, %v1049_v6 }
 0x2a4   : > { %v1278_v41 = vcombine.low %v1253_v33, %v1261_v34  ;;  %v1294_v42 = vcombine.low %v1269_v35, %v1277_v36  ;;  %v1279_v43 = vcombine.high %v1253_v33, %v1261_v34  ;;  %v1295_v44 = vcombine.high %v1269_v35, %v1277_v36 }
 0x2a5   : > { %v1210_v54 = vcombine.low %v1186_v37, %v1202_v39  ;;  %v1211_v55 = vcombine.high %v1186_v37, %v1202_v39  ;;  %v1226_v56 = vcombine.low %v1193_v38, %v1209_v40  ;;  %v1227_v57 = vcombine.high %v1193_v38, %v1209_v40 }
 0x2a6   : > { %v1286_v58 = vrot.slane %v1278_v41, %v4526_v7  ;;  %v1302_v59 = vrot.slane %v1294_v42, %v4526_v7  ;;  %v1293_v60 = vrot.slane %v1279_v43, %v4526_v7  ;;  %v1309_v61 = vrot.slane %v1295_v44, %v4526_v7 }
 0x2a7   : > { %v1218_v62 = vrot.slane %v1210_v54, %v4526_v7  ;;  %v1225_v0 = vrot.slane %v1211_v55, %v4526_v7  ;;  %v1234_v1 = vrot.slane %v1226_v56, %v4526_v7  ;;  %v1241_v2 = vrot.slane %v1227_v57, %v4526_v7 }
 0x2a8   : > { %v1310_v8 = vcombine.low %v1286_v58, %v1302_v59  ;;  %v1312_v9 = vcombine.low %v1293_v60, %v1309_v61  ;;  %v1311_v22 = vcombine.high %v1286_v58, %v1302_v59  ;;  %v1015_v31 = vcombine.high %v4557_v4, %v4560_v5 }
 0x2a9   : > { %v1314_v10 = vcombine.low %v1218_v62, %v1225_v0  ;;  %v3830_v11 = vcombine.high %v1218_v62, %v1225_v0  ;;  %v1330_v12 = vcombine.low %v1234_v1, %v1241_v2  ;;  %v3831_v13 = vcombine.high %v1234_v1, %v1241_v2 }
 0x2aa   : > { %3956 = vmatpush3.xpose.msk.msra.mxu1 %vm1678_vm3, %v1310_v8  ;;  %3966 = vmatpush3.xpose.msk.msra.mxu0 %vm1678_vm3, %v1312_v9  ;;  %v1051_v34 = vcombine.high %v4573_v29, %v4576_v30  ;;  %v1313_v35 = vcombine.high %v1293_v60, %v1309_v61  ;;  %v1058_v36 = vrot.slane %v1050_v23, %v4526_v7 }
 0x2ab   : > { %v1321_v17 = vrot.slane %v1314_v10, %v4516_v63  ;;  %v1329_v18 = vrot.slane %v3830_v11, %v4516_v63  ;;  %v1337_v19 = vrot.slane %v1330_v12, %v4516_v63  ;;  %v1345_v20 = vrot.slane %v3831_v13, %v4516_v63  ;;  %3960 = vmatprep.subr.mxu1 %v4268_v52 }
 0x2ac   : > { %3975 = vmatprep.subr.mxu0 %v4268_v52  ;;  %v1074_v4 = vrot.slane %v1066_v24, %v4526_v7  ;;  %v1067_v5 = vcombine.high %v1041_v3, %v1049_v6  ;;  %v1017_v29 = vcombine.high %v4563_v14, %v4566_v15  ;;  %v1065_v41 = vrot.slane %v1051_v34, %v4526_v7 }
 0x2ad   : > { %v1346_v25 = vcombine.low %v1321_v17, %v1329_v18  ;;  %v1347_v26 = vcombine.high %v1321_v17, %v1329_v18  ;;  %v1362_v27 = vcombine.low %v1337_v19, %v1345_v20  ;;  %v1363_v28 = vcombine.high %v1337_v19, %v1345_v20  ;;  %3958 = vmatmul.mubr.msk.f32.vlgmr.msra.gmra.mxu1 %vm1678_vm3, %v1014_v16 }
 0x2ae   : > { %3968 = vmatmul.mubr.msk.f32.vlgmr.msra.gmra.mxu0 %vm1678_vm3, %v1016_v21  ;;  %3961 = vmatpush3.xpose.msk.msra.mxu1 %vm1678_vm3, %v1311_v22  ;;  %v1082_v30 = vcombine.low %v1058_v36, %v1074_v4  ;;  %v1081_v42 = vrot.slane %v1067_v5, %v4526_v7  ;;  %v1083_v14 = vcombine.high %v1058_v36, %v1074_v4 }
 0x2af   : > { %3962 = vmatprep.mubr.msk.f32.mxu1 %vm4269_vm2, %v4268_v52  ;;  %3970 = vmatprep.subr.mxu1 %v4268_v52  ;;  %v1354_v32 = vrot.slane %v1346_v25, %v4526_v7  ;;  %v1370_v33 = vrot.slane %v1362_v27, %v4526_v7  ;;  %v1361_v38 = vrot.slane %v1347_v26, %v4526_v7 }
 0x2b0   : > { %3977 = vmatprep.mubr.msk.f32.mxu0 %vm4269_vm2, %v4268_v52  ;;  %v1377_v39 = vrot.slane %v1363_v28, %v4526_v7  ;;  %v1084_v15 = vcombine.low %v1065_v41, %v1081_v42  ;;  %v1085_v54 = vcombine.high %v1065_v41, %v1081_v42 }
 0x2b1   : > { %3963 = vmatmul.mubr.msk.f32.vlgmr.msra.gmra.mxu1 %vm1678_vm3, %v1015_v31  ;;  %v1378_v37 = vcombine.low %v1354_v32, %v1370_v33  ;;  %v1379_v40 = vcombine.high %v1354_v32, %v1370_v33 }
 0x2b2   : > { %3971 = vmatpush3.xpose.msk.msra.mxu1 %vm1678_vm3, %v1313_v35  ;;  %3972 = vmatprep.mubr.msk.f32.mxu1 %vm4269_vm2, %v4268_v52  ;;  %v1380_v43 = vcombine.low %v1361_v38, %v1377_v39  ;;  %v1381_v44 = vcombine.high %v1361_v38, %v1377_v39 }
 0x2b3   : > { %3976 = vmatpush3.xpose.msk.msra.mxu0 %vm1678_vm3, %v1378_v37  ;;  %3980 = vmatprep.subr.mxu1 %v4268_v52 }
 0x2b4   : > { %3985 = vmatprep.subr.mxu0 %v4268_v52 }
 0x2b5   : > { %3973 = vmatmul.mubr.msk.f32.vlgmr.msra.gmra.mxu1 %vm1678_vm3, %v1017_v29 }
 0x2b6   : > { %3978 = vmatmul.mubr.msk.f32.vlgmr.msra.gmra.mxu0 %vm1678_vm3, %v1082_v30  ;;  %3981 = vmatpush3.xpose.msk.msra.mxu1 %vm1678_vm3, %v1379_v40 }
 0x2b7   : > { %3986 = vmatpush3.xpose.msk.msra.mxu0 %vm1678_vm3, %v1380_v43  ;;  %3982 = vmatprep.mubr.msk.f32.mxu1 %vm4269_vm2, %v4268_v52 }
 0x2b8   : > { %3987 = vmatprep.mubr.msk.f32.mxu0 %vm4269_vm2, %v4268_v52  ;;  %3990 = vmatprep.subr.mxu1 %v4268_v52 }
 0x2b9   : > { %3983 = vmatmul.mubr.msk.f32.vlgmr.msra.gmra.mxu1 %vm1678_vm3, %v1083_v14  ;;  %3995 = vmatprep.subr.mxu0 %v4268_v52 }
 0x2ba   : > { %3988 = vmatmul.mubr.msk.f32.vlgmr.msra.gmra.mxu0 %vm1678_vm3, %v1084_v15  ;;  %3991 = vmatpush3.xpose.msk.msra.mxu1 %vm1678_vm3, %v1381_v44 }
 0x2bb   : > { %3992 = vmatprep.mubr.msk.f32.mxu1 %vm4269_vm2, %v4268_v52  ;;  %4000 = vmatprep.subr.mxu1 %v4268_v52 }
 0x2bc   : > { %3997 = vmatprep.mubr.msk.f32.mxu0 %vm4269_vm2, %v4268_v52 }
 0x2bd   : > { %3993 = vmatmul.mubr.msk.f32.vlgmr.msra.gmra.mxu1 %vm1678_vm3, %v1085_v54 }
 0x2be   : > { %4002 = vmatprep.mubr.msk.f32.mxu1 %vm4269_vm2, %v4268_v52 }
 0x36d   : > { %v1751_v55 = vpop.f32.mrf.mxu1 }
 0x36e   : > { %v1903_v56 = vpop.f32.mrf.mxu0  ;;  %v2287_v57 = vsel %vm1678_vm3, %v1751_v55, -inf }
 0x36f   : > { %2288 = vmax.xlane.f32.xlu0 %v2287_v57  ;;  %v3959_v58 = vpop.f32.mrf.mxu1  ;;  %v2293_v61 = vsel %vm1678_vm3, %v1903_v56, -inf }
 0x370   : > { %v3969_v59 = vpop.f32.mrf.mxu0 }
 0x371   : > { %v1827_v60 = vpop.f32.mrf.mxu1 }
 0x372   : > { %v2290_v62 = vsel %vm1678_vm3, %v1827_v60, -inf }
 0x373   : > { %2294 = vmax.xlane.f32.xlu0 %v2293_v61  ;;  %2291 = vmax.xlane.f32.xlu1 %v2290_v62  ;;  %v3964_v0 = vpop.f32.mrf.mxu1 }
 0x375   : > { %v1979_v1 = vpop.f32.mrf.mxu1 }
 0x376   : > { %v2055_v2 = vpop.f32.mrf.mxu0  ;;  %v2296_v12 = vsel %vm1678_vm3, %v1979_v1, -inf }
 0x377   : > { %v3974_v3 = vpop.f32.mrf.mxu1  ;;  %v2299_v6 = vsel %vm1678_vm3, %v2055_v2, -inf }
 0x378   : > { %2300 = vmax.xlane.f32.xlu0 %v2299_v6  ;;  %v3979_v8 = vpop.f32.mrf.mxu0 }
 0x379   : > { %v4664_v9 = vpop.f32.mrf.mxu1 }
 0x37a   : > { %v4666_v10 = vpop.f32.mrf.mxu0  ;;  %v2302_v18 = vsel %vm1678_vm3, %v4664_v9, -inf }
 0x37b   : > { %v3984_v11 = vpop.f32.mrf.mxu1  ;;  %v2305_v19 = vsel %vm1678_vm3, %v4666_v10, -inf }
 0x37c   : > { %2297 = vmax.xlane.f32.xlu0 %v2296_v12  ;;  %v3989_v13 = vpop.f32.mrf.mxu0 }
 0x37d   : > { %v4669_v16 = vpop.f32.mrf.mxu1 }
 0x37f   : > { %v3994_v17 = vpop.f32.mrf.mxu1 }
 0x384   : > { %1386 = vrot.lane.b32.xlu1 %v4489_v48, %s4272_s14  ;;  %v2308_v48 = vsel %vm1678_vm3, %v4669_v16, -inf }
 0x388   : > { %1390 = vrot.lane.b32.xlu1 %v4487_v47, %s4272_s14 }
 0x38c   : > { %1394 = vrot.lane.b32.xlu1 %v4493_v49, %s4272_s14 }
 0x392   : > { %1382 = vrot.lane.b32.xlu0 %v4476_v45, %s4272_s14 }
 0x3b0   : > { %2303 = vmax.xlane.f32.xlu1 %v2302_v18 }
 0x3b1   : > { %2306 = vmax.xlane.f32.xlu0 %v2305_v19 }
 0x3b4   : > { %2309 = vmax.xlane.f32.xlu1 %v2308_v48 }
 0x3c5   : > { %1388 = vrot.lane.b32.xlu1 %v4499_v51, %s4272_s14 }
 0x3c7   : > { %1384 = vrot.lane.b32.xlu0 %v4480_v46, %s4272_s14 }
 0x3f8   : > { %v2289_v47 = vpop.xlane.xlu0 %2288 }
 0x3f9   : > { %v2311_v45 = vsub.f32 %v1751_v55, %v2289_v47 }
 0x3fb   : > { %v2319_v49 = vmul.f32 1.442695, %v2311_v45 }
 0x3fc   : > { %v2292_v20 = vpop.xlane.xlu1 %2291  ;;  %v2295_v21 = vpop.xlane.xlu0 %2294 }
 0x3fd   : > { %4137 = vpow2.f32 %v2319_v49  ;;  %v2312_v22 = vsub.f32 %v1827_v60, %v2292_v20  ;;  %v2313_v23 = vsub.f32 %v1903_v56, %v2295_v21 }
 0x3ff   : > { %v2321_v24 = vmul.f32 1.442695, %v2312_v22  ;;  %v2323_v25 = vmul.f32 1.442695, %v2313_v23 }
 0x400   : > { %v1387_v26 = vpop.permute.xlu1 %1386 }
 0x401   : > { %4139 = vpow2.f32 %v2321_v24  ;;  %v2301_v27 = vpop.xlane.xlu0 %2300 }
 0x402   : > { %4141 = vpow2.f32 %v2323_v25  ;;  %v2315_v28 = vsub.f32 %v2055_v2, %v2301_v27 }
 0x404   : > { %v2327_v31 = vmul.f32 1.442695, %v2315_v28  ;;  %v1391_v51 = vpop.permute.xlu1 %1390 }
 0x405   : > { %v2298_v32 = vpop.xlane.xlu0 %2297 }
 0x406   : > { %4143 = vpow2.f32 %v2327_v31  ;;  %v2314_v46 = vsub.f32 %v1979_v1, %v2298_v32 }
 0x408   : > { %v2325_v33 = vmul.f32 1.442695, %v2314_v46  ;;  %v1395_v34 = vpop.permute.xlu1 %1394 }
 0x409   : > { %v1422_v35 = vcombine.low %v1387_v26, %v1395_v34  ;;  %v1423_v36 = vcombine.high %v1387_v26, %v1395_v34  ;;  %v1383_v4 = vpop.permute.xlu0 %1382 }
 0x40a   : > { %v4689_v5 = vpop.eup %4137  ;;  %4145 = vpow2.f32 %v2325_v33  ;;  %v1406_v37 = vcombine.low %v1383_v4, %v1391_v51  ;;  %v1407_v38 = vcombine.high %v1383_v4, %v1391_v51 }
 0x40b   : > { %v1430_v39 = vrot.slane %v1422_v35, %v4516_v63  ;;  %v1437_v29 = vrot.slane %v1423_v36, %v4516_v63  ;;  %v2335_v30 = vsel %vm1678_vm3, %v4689_v5, 0.0 }
 0x40c   : > { %v1414_v40 = vrot.slane %v1406_v37, %v4516_v63  ;;  %v1421_v41 = vrot.slane %v1407_v38, %v4516_v63  ;;  %2336 = vadd.xlane.f32.xlu0 %v2335_v30 }
 0x40e   : > { %v4697_v42 = vpop.eup %4139  ;;  %v1438_v43 = vcombine.low %v1414_v40, %v1430_v39  ;;  %v1439_v14 = vcombine.high %v1414_v40, %v1430_v39  ;;  %v1454_v15 = vcombine.low %v1421_v41, %v1437_v29  ;;  %v1455_v44 = vcombine.high %v1421_v41, %v1437_v29 }
 0x40f   : > { %v4699_v54 = vpop.eup %4141  ;;  %v2338_v55 = vsel %vm1678_vm3, %v4697_v42, 0.0 }
 0x410   : > { %v1446_v56 = vrot.slane %v1438_v43, %v4526_v7  ;;  %v1453_v57 = vrot.slane %v1439_v14, %v4526_v7  ;;  %v1462_v58 = vrot.slane %v1454_v15, %v4526_v7  ;;  %v1469_v59 = vrot.slane %v1455_v44, %v4526_v7  ;;  %2339 = vadd.xlane.f32.xlu1 %v2338_v55 }
 0x411   : > { %v2341_v60 = vsel %vm1678_vm3, %v4699_v54, 0.0 }
 0x412   : > { %v1542_v61 = vcombine.low %v1446_v56, %v1453_v57  ;;  %v3832_v62 = vcombine.high %v1446_v56, %v1453_v57  ;;  %v1558_v0 = vcombine.low %v1462_v58, %v1469_v59  ;;  %v3833_v1 = vcombine.high %v1462_v58, %v1469_v59  ;;  %2342 = vadd.xlane.f32.xlu0 %v2341_v60 }
 0x413   : > { %v4709_v2 = vpop.eup %4143 }
 0x414   : > { %v1549_v3 = vrot.slane %v1542_v61, %v4516_v63  ;;  %v1557_v6 = vrot.slane %v3832_v62, %v4516_v63  ;;  %v1565_v8 = vrot.slane %v1558_v0, %v4516_v63  ;;  %v1573_v11 = vrot.slane %v3833_v1, %v4516_v63 }
 0x415   : > { %v2347_v12 = vsel %vm1678_vm3, %v4709_v2, 0.0 }
 0x416   : > { %2348 = vadd.xlane.f32.xlu0 %v2347_v12  ;;  %v1574_v13 = vcombine.low %v1549_v3, %v1557_v6  ;;  %v1590_v17 = vcombine.low %v1565_v8, %v1573_v11  ;;  %v1575_v18 = vcombine.high %v1549_v3, %v1557_v6  ;;  %v1591_v19 = vcombine.high %v1565_v8, %v1573_v11 }
 0x417   : > { %v4717_v48 = vpop.eup %4145 }
 0x418   : > { %v2344_v47 = vsel %vm1678_vm3, %v4717_v48, 0.0  ;;  %v1582_v45 = vrot.slane %v1574_v13, %v4526_v7  ;;  %v1598_v49 = vrot.slane %v1590_v17, %v4526_v7  ;;  %v1589_v20 = vrot.slane %v1575_v18, %v4526_v7 }
 0x419   : > { %2345 = vadd.xlane.f32.xlu1 %v2344_v47  ;;  %v1605_v21 = vrot.slane %v1591_v19, %v4526_v7 }
 0x41a   : > { %v1606_v22 = vcombine.low %v1582_v45, %v1598_v49  ;;  %v1607_v23 = vcombine.high %v1582_v45, %v1598_v49 }
 0x41b   : > { %v1608_v24 = vcombine.low %v1589_v20, %v1605_v21  ;;  %v1609_v25 = vcombine.high %v1589_v20, %v1605_v21 }
 0x41c   : > { %3996 = vmatpush3.msra.mxu0 %v1606_v22  ;;  %4001 = vmatpush3.msra.mxu1 %v1607_v23 }
 0x41d   : > { %4005 = vmatprep.subr.mxu0 %v4268_v52  ;;  %4010 = vmatprep.subr.mxu1 %v4268_v52 }
 0x439   : > { %v2304_v26 = vpop.xlane.xlu1 %2303 }
 0x43a   : > { %v2316_v27 = vsub.f32 %v4664_v9, %v2304_v26  ;;  %v2307_v28 = vpop.xlane.xlu0 %2306 }
 0x43b   : > { %v2317_v31 = vsub.f32 %v4666_v10, %v2307_v28 }
 0x43c   : > { %v2329_v51 = vmul.f32 1.442695, %v2316_v27 }
 0x43d   : > { %v2331_v32 = vmul.f32 1.442695, %v2317_v31  ;;  %v2310_v46 = vpop.xlane.xlu1 %2309 }
 0x43e   : > { %4147 = vpow2.f32 %v2329_v51  ;;  %v2318_v33 = vsub.f32 %v4669_v16, %v2310_v46  ;;  %v1385_v37 = vpop.permute.xlu0 %1384 }
 0x43f   : > { %4149 = vpow2.f32 %v2331_v32 }
 0x440   : > { %v2333_v34 = vmul.f32 1.442695, %v2318_v33 }
 0x441   : > { %v1389_v38 = vpop.permute.xlu1 %1388 }
 0x442   : > { %4151 = vpow2.f32 %v2333_v34 }
 0x44b   : > { %v4730_v35 = vpop.eup %4147 }
 0x44c   : > { %v4732_v36 = vpop.eup %4149  ;;  %v2350_v4 = vsel %vm1678_vm3, %v4730_v35, 0.0 }
 0x44d   : > { %2351 = vadd.xlane.f32.xlu1 %v2350_v4  ;;  %v2353_v9 = vsel %vm1678_vm3, %v4732_v36, 0.0 }
 0x44e   : > { %2354 = vadd.xlane.f32.xlu0 %v2353_v9 }
 0x44f   : > { %v4738_v10 = vpop.eup %4151 }
 0x450   : > { %v2356_v16 = vsel %vm1678_vm3, %v4738_v10, 0.0 }
 0x451   : > { %2357 = vadd.xlane.f32.xlu1 %v2356_v16 }
 0x462   : > { %1396 = vrot.lane.b32.xlu1 %v4504_v53, %s4272_s14 }
 0x464   : > { %1392 = vrot.lane.b32.xlu0 %v4497_v50, %s4272_s14 }
 0x495   : > { %v2337_v39 = vpop.xlane.xlu0 %2336 }
 0x496   : > { %4153 = vrcp.f32 %v2337_v39 }
 0x499   : > { %v2340_v29 = vpop.xlane.xlu1 %2339 }
 0x49a   : > { %4155 = vrcp.f32 %v2340_v29 }
 0x49b   : > { %v2343_v30 = vpop.xlane.xlu0 %2342 }
 0x49c   : > { %4157 = vrcp.f32 %v2343_v30 }
 0x49f   : > { %v2349_v44 = vpop.xlane.xlu0 %2348 }
 0x4a2   : > { %v2346_v40 = vpop.xlane.xlu1 %2345 }
 0x4a3   : > { %v4154_v41 = vpop.eup %4153  ;;  %4159 = vrcp.f32 %v2346_v40 }
 0x4a4   : > { %v2367_v43 = vmul.f32 %v4154_v41, %v4689_v5  ;;  %4161 = vrcp.f32 %v2349_v44 }
 0x4a6   : > { %3998 = vmatmul.mubr.msk.f32.vlgmr.msra.gmra.mxu0 %vm1678_vm3, %v2367_v43 }
 0x4a7   : > { %v4156_v14 = vpop.eup %4155  ;;  %4006 = vmatpush3.msra.mxu0 %v1608_v24  ;;  %4007 = vmatprep.mubr.msk.f32.mxu0 %vm4269_vm2, %v4268_v52 }
 0x4a8   : > { %v2368_v50 = vmul.f32 %v4156_v14, %v4697_v42  ;;  %4015 = vmatprep.subr.mxu0 %v4268_v52 }
 0x4a9   : > { %v4158_v53 = vpop.eup %4157 }
 0x4aa   : > { %4003 = vmatmul.mubr.msk.f32.vlgmr.msra.gmra.mxu1 %vm1678_vm3, %v2368_v50  ;;  %v2369_v15 = vmul.f32 %v4158_v53, %v4699_v54 }
 0x4ab   : > { %4011 = vmatpush3.msra.mxu1 %v1609_v25  ;;  %4012 = vmatprep.mubr.msk.f32.mxu1 %vm4269_vm2, %v4268_v52 }
 0x4ac   : > { %4008 = vmatmul.mubr.msk.f32.vlgmr.msra.gmra.mxu0 %vm1678_vm3, %v2369_v15  ;;  %4020 = vmatprep.subr.mxu1 %v4268_v52 }
 0x4ad   : > { %4017 = vmatprep.mubr.msk.f32.mxu0 %vm4269_vm2, %v4268_v52 }
 0x4b0   : > { %v4160_v5 = vpop.eup %4159 }
 0x4b1   : > { %v2370_v42 = vmul.f32 %v4160_v5, %v4717_v48  ;;  %v4162_v31 = vpop.eup %4161 }
 0x4b3   : > { %4013 = vmatmul.mubr.msk.f32.vlgmr.msra.gmra.mxu1 %vm1678_vm3, %v2370_v42 }
 0x4b4   : > { %4022 = vmatprep.mubr.msk.f32.mxu1 %vm4269_vm2, %v4268_v52 }
 0x4d6   : > { %v2352_v54 = vpop.xlane.xlu1 %2351 }
 0x4d7   : > { %v2355_v55 = vpop.xlane.xlu0 %2354  ;;  %4163 = vrcp.f32 %v2352_v54 }
 0x4d8   : > { %4165 = vrcp.f32 %v2355_v55 }
 0x4da   : > { %v2358_v56 = vpop.xlane.xlu1 %2357 }
 0x4db   : > { %v1393_v57 = vpop.permute.xlu0 %1392  ;;  %4167 = vrcp.f32 %v2358_v56 }
 0x4dc   : > { %v1474_v58 = vcombine.low %v1385_v37, %v1393_v57  ;;  %v1475_v59 = vcombine.high %v1385_v37, %v1393_v57  ;;  %v2371_v37 = vmul.f32 %v4162_v31, %v4709_v2 }
 0x4de   : > { %v1397_v60 = vpop.permute.xlu1 %1396  ;;  %v1482_v0 = vrot.slane %v1474_v58, %v4516_v63  ;;  %v1489_v1 = vrot.slane %v1475_v59, %v4516_v63 }
 0x4df   : > { %v1490_v61 = vcombine.low %v1389_v38, %v1397_v60  ;;  %v1491_v62 = vcombine.high %v1389_v38, %v1397_v60 }
 0x4e1   : > { %v1498_v3 = vrot.slane %v1490_v61, %v4516_v63  ;;  %v1505_v6 = vrot.slane %v1491_v62, %v4516_v63 }
 0x4e3   : > { %v1506_v8 = vcombine.low %v1482_v0, %v1498_v3  ;;  %v1507_v11 = vcombine.high %v1482_v0, %v1498_v3  ;;  %v1522_v12 = vcombine.low %v1489_v1, %v1505_v6  ;;  %v1523_v13 = vcombine.high %v1489_v1, %v1505_v6 }
 0x4e4   : > { %v4164_v51 = vpop.eup %4163 }
 0x4e5   : > { %v1514_v17 = vrot.slane %v1506_v8, %v4526_v7  ;;  %v1521_v18 = vrot.slane %v1507_v11, %v4526_v7  ;;  %v1530_v19 = vrot.slane %v1522_v12, %v4526_v7  ;;  %v1537_v48 = vrot.slane %v1523_v13, %v4526_v7  ;;  %v4166_v4 = vpop.eup %4165 }
 0x4e6   : > { %v2372_v38 = vmul.f32 %v4164_v51, %v4730_v35  ;;  %v2373_v40 = vmul.f32 %v4166_v4, %v4732_v36 }
 0x4e7   : > { %v1610_v47 = vcombine.low %v1514_v17, %v1521_v18  ;;  %v3834_v45 = vcombine.high %v1514_v17, %v1521_v18  ;;  %v1626_v49 = vcombine.low %v1530_v19, %v1537_v48  ;;  %v3835_v20 = vcombine.high %v1530_v19, %v1537_v48 }
 0x4e8   : > { %v4168_v39 = vpop.eup %4167 }
 0x4e9   : > { %v1617_v21 = vrot.slane %v1610_v47, %v4516_v63  ;;  %v1625_v22 = vrot.slane %v3834_v45, %v4516_v63  ;;  %v1633_v23 = vrot.slane %v1626_v49, %v4516_v63  ;;  %v1641_v24 = vrot.slane %v3835_v20, %v4516_v63 }
 0x4ea   : > { %v2374_v2 = vmul.f32 %v4168_v39, %v4738_v10 }
 0x4eb   : > { %v1642_v25 = vcombine.low %v1617_v21, %v1625_v22  ;;  %v1658_v26 = vcombine.low %v1633_v23, %v1641_v24  ;;  %v1643_v27 = vcombine.high %v1617_v21, %v1625_v22  ;;  %v1659_v28 = vcombine.high %v1633_v23, %v1641_v24 }
 0x4ed   : > { %v1650_v32 = vrot.slane %v1642_v25, %v4526_v7  ;;  %v1666_v46 = vrot.slane %v1658_v26, %v4526_v7  ;;  %v1657_v33 = vrot.slane %v1643_v27, %v4526_v7  ;;  %v1673_v34 = vrot.slane %v1659_v28, %v4526_v7 }
 0x4ef   : > { %v1674_v9 = vcombine.low %v1650_v32, %v1666_v46  ;;  %v1675_v16 = vcombine.high %v1650_v32, %v1666_v46  ;;  %v1676_v29 = vcombine.low %v1657_v33, %v1673_v34  ;;  %v1677_v30 = vcombine.high %v1657_v33, %v1673_v34 }
 0x4f1   : > { %4016 = vmatpush3.msra.mxu0 %v1674_v9  ;;  %4021 = vmatpush3.msra.mxu1 %v1675_v16 }
 0x4f2   : > { %4018 = vmatmul.mubr.msk.f32.vlgmr.msra.gmra.mxu0 %vm1678_vm3, %v2371_v37  ;;  %4023 = vmatmul.mubr.msk.f32.vlgmr.msra.gmra.mxu1 %vm1678_vm3, %v2372_v38 }
 0x4f3   : > { %4025 = vmatprep.subr.mxu0 %v4268_v52  ;;  %4030 = vmatprep.subr.mxu1 %v4268_v52 }
 0x4f4   : > { %4026 = vmatpush3.msra.mxu0 %v1676_v29  ;;  %4031 = vmatpush3.msra.mxu1 %v1677_v30 }
 0x4f5   : > { %4027 = vmatprep.mubr.msk.f32.mxu0 %vm4269_vm2, %v4268_v52  ;;  %4032 = vmatprep.mubr.msk.f32.mxu1 %vm4269_vm2, %v4268_v52 }
 0x4f6   : > { %4028 = vmatmul.mubr.msk.f32.vlgmr.msra.gmra.mxu0 %vm1678_vm3, %v2373_v40  ;;  %4033 = vmatmul.mubr.msk.f32.vlgmr.msra.gmra.mxu1 %vm1678_vm3, %v2374_v2 }
 0x566   : > { %v2444_v35 = vpop.f32.mrf.mxu0 }
 0x568   : > { %v3999_v41 = vpop.f32.mrf.mxu0 }
 0x56a   : > { %v2517_v43 = vpop.f32.mrf.mxu1 }
 0x56c   : > { %v2590_v14 = vpop.f32.mrf.mxu0  ;;  %v4004_v50 = vpop.f32.mrf.mxu1 }
 0x56d   : > { %v2959_v15 = vcombine.low %v2444_v35, %v2590_v14  ;;  %v2960_v36 = vcombine.high %v2444_v35, %v2590_v14  ;;  %v3265_v14 = vld [vmem:[%s4409_s20 + $0x10] sm:$0xff] }
 0x56e   : > { %v4009_v53 = vpop.f32.mrf.mxu0 }
 0x56f   : > { %v2967_v54 = vrot.slane %v2959_v15, %v4516_v63  ;;  %v2974_v52 = vrot.slane %v2960_v36, %v4516_v63 }
 0x573   : > { %v2663_v5 = vpop.f32.mrf.mxu1 }
 0x574   : > { %v2975_v10 = vcombine.low %v2517_v43, %v2663_v5  ;;  %v2976_v42 = vcombine.high %v2517_v43, %v2663_v5  ;;  %v3266_v43 = vld [vmem:[%s4409_s20 + $0x18] sm:$0xff] }
 0x575   : > { %v4014_v44 = vpop.f32.mrf.mxu1  ;;  %4035 = vmatprep.subr.mxu0 %v3266_v43 }
 0x576   : > { %v2983_v55 = vrot.slane %v2975_v10, %v4516_v63  ;;  %v2990_v56 = vrot.slane %v2976_v42, %v4516_v63  ;;  %4036 = vmatpush3.msra.mxu0 %v3266_v43 }
 0x577   : > { %4037 = vmatprep.subr.mxu0 %v3265_v14 }
 0x578   : > { %v2991_v57 = vcombine.low %v2967_v54, %v2983_v55  ;;  %v2992_v58 = vcombine.high %v2967_v54, %v2983_v55  ;;  %v3007_v59 = vcombine.low %v2974_v52, %v2990_v56  ;;  %v3008_v60 = vcombine.high %v2974_v52, %v2990_v56  ;;  %4038 = vmatpush3.msra.mxu0 %v3265_v14  ;;  %v3264_v54 = vld [vmem:[%s4409_s20 + $0x8] sm:$0xff]  ;;  %v3263_v52 = vld [vmem:[%s4409_s20] sm:$0xff] }
 0x579   : > { %4039 = vmatprep.subr.mxu0 %v3264_v54 }
 0x57a   : > { %v2999_v61 = vrot.slane %v2991_v57, %v4526_v7  ;;  %v3006_v62 = vrot.slane %v2992_v58, %v4526_v7  ;;  %v3015_v0 = vrot.slane %v3007_v59, %v4526_v7  ;;  %v3022_v1 = vrot.slane %v3008_v60, %v4526_v7  ;;  %4040 = vmatpush3.msra.mxu0 %v3264_v54 }
 0x57b   : > { %4041 = vmatprep.subr.mxu0 %v3263_v52 }
 0x57c   : > { %v3095_v3 = vcombine.low %v2999_v61, %v3006_v62  ;;  %v3860_v6 = vcombine.high %v2999_v61, %v3006_v62  ;;  %v3111_v8 = vcombine.low %v3015_v0, %v3022_v1  ;;  %v3861_v11 = vcombine.high %v3015_v0, %v3022_v1  ;;  %4042 = vmatpush3.msra.mxu0 %v3263_v52 }
 0x57e   : > { %v3102_v12 = vrot.slane %v3095_v3, %v4516_v63  ;;  %v3110_v13 = vrot.slane %v3860_v6, %v4516_v63  ;;  %v3118_v17 = vrot.slane %v3111_v8, %v4516_v63  ;;  %v3126_v18 = vrot.slane %v3861_v11, %v4516_v63 }
 0x580   : > { %v3127_v19 = vcombine.low %v3102_v12, %v3110_v13  ;;  %v3143_v48 = vcombine.low %v3118_v17, %v3126_v18  ;;  %v3128_v47 = vcombine.high %v3102_v12, %v3110_v13  ;;  %v3144_v45 = vcombine.high %v3118_v17, %v3126_v18 }
 0x582   : > { %v4807_v49 = vrot.slane %v3127_v19, %v4526_v7  ;;  %v4810_v20 = vrot.slane %v3143_v48, %v4526_v7  ;;  %v3142_v22 = vrot.slane %v3128_v47, %v4526_v7  ;;  %v3158_v23 = vrot.slane %v3144_v45, %v4526_v7 }
 0x584   : > { %v3160_v21 = vcombine.high %v4807_v49, %v4810_v20  ;;  %v3159_v24 = vcombine.low %v4807_v49, %v4810_v20  ;;  %v3161_v25 = vcombine.low %v3142_v22, %v3158_v23  ;;  %v3162_v26 = vcombine.high %v3142_v22, %v3158_v23  ;;  %v3866_v49 = vld [vmem:[%s4972_s21] ss:$0 sm:$0xff]  ;;  %v4177_v20 = vld [vmem:[#allocation2 + $0x8] sm:$0xff] }
 0x586   : > { %3233 = vrot.lane.b32.xlu0 %v3160_v21, %s4273_s17 }
 0x58a   : > { %3241 = vrot.lane.b32.xlu0 %v3161_v25, %s4274_s18 }
 0x58e   : > { %3249 = vrot.lane.b32.xlu0 %v3162_v26, %s4275_s19 }
 0x5b2   : > { %v2736_v27 = vpop.f32.mrf.mxu0  ;;  %v2809_v28 = vpop.f32.mrf.mxu1 }
 0x5b4   : > { %v4019_v31 = vpop.f32.mrf.mxu0  ;;  %v4024_v51 = vpop.f32.mrf.mxu1 }
 0x5b5   : > { %v4178_v31 = vld [vmem:[#allocation2] sm:$0xff] }
 0x5b6   : > { %v2882_v32 = vpop.f32.mrf.mxu0  ;;  %v2955_v46 = vpop.f32.mrf.mxu1 }
 0x5b7   : > { %v3027_v33 = vcombine.low %v2736_v27, %v2882_v32  ;;  %v3028_v34 = vcombine.high %v2736_v27, %v2882_v32  ;;  %v3043_v4 = vcombine.low %v2809_v28, %v2955_v46  ;;  %v3044_v9 = vcombine.high %v2809_v28, %v2955_v46 }
 0x5b8   : > { %v4029_v16 = vpop.f32.mrf.mxu0  ;;  %v4034_v37 = vpop.f32.mrf.mxu1 }
 0x5b9   : > { %v3035_v38 = vrot.slane %v3027_v33, %v4516_v63  ;;  %v3042_v39 = vrot.slane %v3028_v34, %v4516_v63  ;;  %v3051_v29 = vrot.slane %v3043_v4, %v4516_v63  ;;  %v3058_v30 = vrot.slane %v3044_v9, %v4516_v63  ;;  %v3412_v37 = vld [vmem:[%s4426_s1 + $0x18] sm:$0xff] }
 0x5ba   : > { %4046 = vmatprep.subr.mxu1 %v3412_v37 }
 0x5bb   : > { %v3059_v40 = vcombine.low %v3035_v38, %v3051_v29  ;;  %v3060_v2 = vcombine.high %v3035_v38, %v3051_v29  ;;  %v3075_v35 = vcombine.low %v3042_v39, %v3058_v30  ;;  %v3076_v41 = vcombine.high %v3042_v39, %v3058_v30  ;;  %v3411_v38 = vld [vmem:[%s4426_s1 + $0x10] sm:$0xff]  ;;  %4047 = vmatpush3.msra.mxu1 %v3412_v37  ;;  %v3410_v39 = vld [vmem:[%s4426_s1 + $0x8] sm:$0xff]  ;;  %v3409_v29 = vld [vmem:[%s4426_s1] sm:$0xff] }
 0x5bc   : > { %4048 = vmatprep.subr.mxu1 %v3411_v38 }
 0x5bd   : > { %v3067_v50 = vrot.slane %v3059_v40, %v4526_v7  ;;  %v3074_v53 = vrot.slane %v3060_v2, %v4526_v7  ;;  %v3083_v15 = vrot.slane %v3075_v35, %v4526_v7  ;;  %v3090_v36 = vrot.slane %v3076_v41, %v4526_v7  ;;  %4049 = vmatpush3.msra.mxu1 %v3411_v38 }
 0x5be   : > { %4050 = vmatprep.subr.mxu1 %v3410_v39 }
 0x5bf   : > { %v3163_v5 = vcombine.low %v3067_v50, %v3074_v53  ;;  %v3862_v10 = vcombine.high %v3067_v50, %v3074_v53  ;;  %v3179_v42 = vcombine.low %v3083_v15, %v3090_v36  ;;  %v3863_v44 = vcombine.high %v3083_v15, %v3090_v36  ;;  %4051 = vmatpush3.msra.mxu1 %v3410_v39 }
 0x5c0   : > { %4052 = vmatprep.subr.mxu1 %v3409_v29 }
 0x5c1   : > { %v3170_v55 = vrot.slane %v3163_v5, %v4516_v63  ;;  %v3178_v56 = vrot.slane %v3862_v10, %v4516_v63  ;;  %v3186_v57 = vrot.slane %v3179_v42, %v4516_v63  ;;  %v3194_v58 = vrot.slane %v3863_v44, %v4516_v63  ;;  %4053 = vmatpush3.msra.mxu1 %v3409_v29 }
 0x5c3   : > { %v3195_v59 = vcombine.low %v3170_v55, %v3178_v56  ;;  %v3211_v60 = vcombine.low %v3186_v57, %v3194_v58  ;;  %v3196_v61 = vcombine.high %v3170_v55, %v3178_v56  ;;  %v3212_v62 = vcombine.high %v3186_v57, %v3194_v58  ;;  %v3867_v56 = vld [vmem:[%s635_s15] ss:$0 sm:$0xff] }
 0x5c4   : > { %v3868_v58 = vld [vmem:[%s638_s13] ss:$0 sm:$0xff] }
 0x5c5   : > { %v3203_v0 = vrot.slane %v3195_v59, %v4526_v7  ;;  %v3219_v1 = vrot.slane %v3211_v60, %v4526_v7  ;;  %v3210_v6 = vrot.slane %v3196_v61, %v4526_v7  ;;  %v3226_v8 = vrot.slane %v3212_v62, %v4526_v7 }
 0x5c7   : > { %v3228_v3 = vcombine.high %v3203_v0, %v3219_v1  ;;  %v3227_v11 = vcombine.low %v3203_v0, %v3219_v1  ;;  %v3229_v63 = vcombine.low %v3210_v6, %v3226_v8  ;;  %v3230_v12 = vcombine.high %v3210_v6, %v3226_v8  ;;  %v3518_v6 = vld [vmem:[%s4436_s0 + $0x38] sm:$0xff]  ;;  %v3517_v8 = vld [vmem:[%s4436_s0 + $0x30] sm:$0xff] }
 0x5c8   : > { %4057 = vmatprep.subr.mxu0 %v3518_v6 }
 0x5c9   : > { %3235 = vrot.lane.b32.xlu1 %v3228_v3, %s4273_s17 }
 0x5cd   : > { %3243 = vrot.lane.b32.xlu1 %v3229_v63, %s4274_s18  ;;  %v3515_v63 = vld [vmem:[%s4436_s0 + $0x20] sm:$0xff] }
 0x5d1   : > { %3251 = vrot.lane.b32.xlu1 %v3230_v12, %s4275_s19  ;;  %v3514_v12 = vld [vmem:[%s4436_s0 + $0x18] sm:$0xff] }
 0x5f8   : > { %v3234_v13 = vpop.permute.xlu0 %3233 }
 0x5f9   : > { %v3255_v18 = vsel %vm1678_vm3, %v3159_v24, %v3234_v13  ;;  %v3513_v13 = vld [vmem:[%s4436_s0 + $0x10] sm:$0xff] }
 0x5fc   : > { %v3242_v17 = vpop.permute.xlu0 %3241 }
 0x5fd   : > { %v3258_v7 = vsel %vm3257_vm4, %v3255_v18, %v3242_v17  ;;  %v3512_v17 = vld [vmem:[%s4436_s0 + $0x8] sm:$0xff]  ;;  %v3511_v18 = vld [vmem:[%s4436_s0] sm:$0xff] }
 0x600   : > { %v3250_v19 = vpop.permute.xlu0 %3249 }
 0x601   : > { %v3261_v48 = vsel %vm3260_vm5, %v3258_v7, %v3250_v19  ;;  %v3869_v7 = vld [vmem:[%s624_s3] ss:$0 sm:$0xff] }
 0x602   : > { %4043 = vmatprep.mubr.msk.f32.mxu0 %vm652_vm1, %v3261_v48 }
 0x63b   : > { %v3236_v47 = vpop.permute.xlu1 %3235 }
 0x63c   : > { %v3256_v21 = vsel %vm1678_vm3, %v3227_v11, %v3236_v47  ;;  %v3516_v11 = vld [vmem:[%s4436_s0 + $0x28] sm:$0xff] }
 0x63f   : > { %v3244_v45 = vpop.permute.xlu1 %3243 }
 0x640   : > { %v3259_v22 = vsel %vm3257_vm4, %v3256_v21, %v3244_v45 }
 0x643   : > { %v3252_v23 = vpop.permute.xlu1 %3251 }
 0x644   : > { %v3262_v25 = vsel %vm3260_vm5, %v3259_v22, %v3252_v23 }
 0x645   : > { %4044 = vmatmul.mubr.msk.f32.vlgmr.msra.gmra.mxu0 %vm652_vm1, %v3262_v25 }
 0x646   : > { %4058 = vmatpush3.msra.mxu0 %v3518_v6 }
 0x647   : > { %4059 = vmatprep.subr.mxu0 %v3517_v8 }
 0x648   : > { %4060 = vmatpush3.msra.mxu0 %v3517_v8 }
 0x649   : > { %4061 = vmatprep.subr.mxu0 %v3516_v11 }
 0x64a   : > { %4062 = vmatpush3.msra.mxu0 %v3516_v11 }
 0x64b   : > { %4063 = vmatprep.subr.mxu0 %v3515_v63 }
 0x64c   : > { %4064 = vmatpush3.msra.mxu0 %v3515_v63 }
 0x64d   : > { %4065 = vmatprep.subr.mxu0 %v3514_v12 }
 0x64e   : > { %4066 = vmatpush3.msra.mxu0 %v3514_v12 }
 0x64f   : > { %4067 = vmatprep.subr.mxu0 %v3513_v13 }
 0x650   : > { %4068 = vmatpush3.msra.mxu0 %v3513_v13 }
 0x651   : > { %4069 = vmatprep.subr.mxu0 %v3512_v17 }
 0x652   : > { %4070 = vmatpush3.msra.mxu0 %v3512_v17 }
 0x653   : > { %4071 = vmatprep.subr.mxu0 %v3511_v18 }
 0x654   : > { %4072 = vmatpush3.msra.mxu0 %v3511_v18 }
 0x705   : > { %v4045_v26 = vpop.f32.mrf.mxu0 }
 0x706   : > { %v3349_v24 = vadd.f32 %v4177_v20, %v4045_v26 }
 0x707   : > { %v3339_v27 = vpop.f32.mrf.mxu0 }
 0x708   : > { %v4856_v28 = vadd.f32 %v3866_v49, %v3349_v24  ;;  %v3348_v51 = vadd.f32 %v4178_v31, %v3339_v27 }
 0x70a   : > { %v4858_v32 = vadd.f32 %v3866_v49, %v3348_v51  ;;  %v3364_v46 = vsel %vm652_vm1, %v4856_v28, 0.0  ;;  %v3370_v9 = vmul.f32 %v4856_v28, %v4856_v28  ;;  %v3872_v51 = vld [vmem:[%s632_s24] ss:$0 sm:$0xff] }
 0x70b   : > { %3365 = vadd.xlane.f32.xlu1 %v3364_v46 }
 0x70c   : > { %v3361_v33 = vsel %vm652_vm1, %v4858_v32, 0.0  ;;  %v3369_v34 = vmul.f32 %v4858_v32, %v4858_v32  ;;  %v3374_v16 = vsel %vm652_vm1, %v3370_v9, 0.0 }
 0x70d   : > { %3362 = vadd.xlane.f32.xlu0 %v3361_v33 }
 0x70e   : > { %v3371_v4 = vsel %vm652_vm1, %v3369_v34, 0.0 }
 0x711   : > { %3372 = vadd.xlane.f32.xlu0 %v3371_v4 }
 0x715   : > { %3375 = vadd.xlane.f32.xlu0 %v3374_v16 }
 0x794   : > { %v3366_v2 = vpop.xlane.xlu1 %3365 }
 0x795   : > { %v3368_v41 = vmul.f32 0.03125, %v3366_v2 }
 0x796   : > { %v3363_v30 = vpop.xlane.xlu0 %3362 }
 0x797   : > { %v3367_v40 = vmul.f32 0.03125, %v3363_v30  ;;  %v3380_v15 = vmul.f32 %v3368_v41, %v3368_v41  ;;  %v3386_v59 = vsub.f32 %v4856_v28, %v3368_v41 }
 0x799   : > { %v3379_v43 = vmul.f32 %v3367_v40, %v3367_v40  ;;  %v3385_v52 = vsub.f32 %v4858_v32, %v3367_v40 }
 0x79a   : > { %v3373_v35 = vpop.xlane.xlu0 %3372 }
 0x79b   : > { %v3377_v14 = vmul.f32 0.03125, %v3373_v35 }
 0x79d   : > { %v3381_v50 = vsub.f32 %v3377_v14, %v3379_v43 }
 0x79e   : > { %v3376_v53 = vpop.xlane.xlu0 %3375 }
 0x79f   : > { %v3383_v36 = vmax.f32 %v3381_v50, 0.0  ;;  %v3378_v5 = vmul.f32 0.03125, %v3376_v53 }
 0x7a1   : > { %v3387_v10 = vadd.f32 1e-06, %v3383_v36  ;;  %v3382_v42 = vsub.f32 %v3378_v5, %v3380_v15 }
 0x7a3   : > { %4169 = vrsqrt.f32 %v3387_v10  ;;  %v3384_v44 = vmax.f32 %v3382_v42, 0.0 }
 0x7a5   : > { %v3388_v54 = vadd.f32 1e-06, %v3384_v44 }
 0x7a7   : > { %4171 = vrsqrt.f32 %v3388_v54 }
 0x7b0   : > { %v4170_v55 = vpop.eup %4169 }
 0x7b1   : > { %v3391_v57 = vmul.f32 %v4170_v55, %v3385_v52 }
 0x7b3   : > { %v3399_v60 = vmul.f32 %v3867_v56, %v3391_v57 }
 0x7b4   : > { %v4172_v61 = vpop.eup %4171 }
 0x7b5   : > { %v3392_v62 = vmul.f32 %v4172_v61, %v3386_v59  ;;  %v3407_v0 = vadd.f32 %v3868_v58, %v3399_v60 }
 0x7b7   : > { %v3400_v1 = vmul.f32 %v3867_v56, %v3392_v62  ;;  %4054 = vmatprep.mubr.msk.f32.mxu1 %vm652_vm1, %v3407_v0 }
 0x7b9   : > { %v3408_v3 = vadd.f32 %v3868_v58, %v3400_v1 }
 0x7bb   : > { %4055 = vmatmul.mubr.msk.f32.vlgmr.msra.gmra.mxu1 %vm652_vm1, %v3408_v3 }
 0x87b   : > { %v4056_v19 = vpop.f32.mrf.mxu1 }
 0x87c   : > { %v3498_v48 = vadd.f32 %v4056_v19, %v3869_v7 }
 0x87d   : > { %v3492_v47 = vpop.f32.mrf.mxu1 }
 0x87e   : > { %v3504_v45 = vmul.f32 0.70710677, %v3498_v48  ;;  %v3493_v21 = vadd.f32 %v3869_v7, %v3492_v47  ;;  %v3502_v24 = vmul.f32 0.5, %v3498_v48 }
 0x880   : > { %4173 = verf.f32 %v3504_v45  ;;  %v3503_v22 = vmul.f32 0.70710677, %v3493_v21  ;;  %v3501_v49 = vmul.f32 0.5, %v3493_v21 }
 0x882   : > { %4175 = verf.f32 %v3503_v22 }
 0x88d   : > { %v4174_v23 = vpop.eup %4173 }
 0x88e   : > { %v3508_v26 = vadd.f32 1.0, %v4174_v23 }
 0x88f   : > { %v4176_v25 = vpop.eup %4175 }
 0x890   : > { %v3507_v20 = vadd.f32 1.0, %v4176_v25  ;;  %v3510_v31 = vmul.f32 %v3508_v26, %v3502_v24 }
 0x892   : > { %v3509_v27 = vmul.f32 %v3507_v20, %v3501_v49 }
 0x894   : > { %4073 = vmatprep.mubr.msk.f32.mxu0 %vm3526_vm6, %v3509_v27 }
 0x895   : > { %4074 = vmatmul.mubr.msk.f32.vlgmr.msra.gmra.mxu0 %vm3526_vm6, %v3510_v31 }
 0x955   : > { %v4075_v46 = vpop.f32.mrf.mxu0 }
 0x956   : > { %v3605_v33 = vadd.f32 %v4075_v46, %v3872_v51 }
 0x957   : > { %v3599_v34 = vpop.f32.mrf.mxu0 }
 0x958   : > { %v3609_v4 = vadd.f32 %v3605_v33, %v4856_v28  ;;  %v3600_v9 = vadd.f32 %v3872_v51, %v3599_v34  ;;  %3615 = sbr.rel (%p3875_p3) target bundleno = 2405 (0x965), region = 84 }
 0x95a   : > { %3611 = vst.msk [vmem:[#allocation2 + $0x8] sm:$0xff] %vm652_vm1, %v3609_v4  ;;  %v3608_v16 = vadd.f32 %v3600_v9, %v4858_v32 }
 0x95c   : > { %3610 = vst.msk [vmem:[#allocation2] sm:$0xff] %vm652_vm1, %v3608_v16 }
 0x961   : > { %v3617_v38 = vld [vmem:[#allocation2 + $0x8] sm:$0xff] }
 0x962   : > { %3619 = vst.msk [vmem:[#allocation6 + $0x8] sm:$0xff] %vm652_vm1, %v3617_v38 }
 0x963   : > { %v3616_v37 = vld [vmem:[#allocation2] sm:$0xff] }
 0x964   : > { %3618 = vst.msk [vmem:[#allocation6] sm:$0xff] %vm652_vm1, %v3616_v37 }
 0x965 PF: > { %s4973_s22 = sld [smem:[#allocation10_spill]]  ;;  %s4276_s16 = smov [#allocation6]  }
 0x966   : > { %s3629_s27 = sshll.u32 %s4276_s16, 4  ;;  %s3630_s27 = int_to_ptr.vmem [resolvable:$true] %s3629_s27 }
 0x967   : > { %s4205_s14 = scalar_lea.vmem %s3630_s27, 256  ;;  %p4212_p8 = scmp.lt.s32.totalorder %s3630_s27, %s3630_s27 }
 0x968   : > { %p4206_p5 = scmp.ne.s32.totalorder %s3630_s27, %s4205_s14  ;;  %p4213_p9 = scmp.lt.s32.totalorder %s4205_s14, %s4205_s14 }
 0x96a   : > { %p4214_p10 = por %p4213_p9, %p4212_p8 }
 0x96b   : > { %s4974_s24 = sadd.s32 4294967295, %s4973_s22  }
 0x96c   : > { %p4915_p4 = scmp.eq.s32.totalorder %s4974_s24, 1 }
 0x96e   : > { %p4207_p6 = pnand %p4206_p5, %p4915_p4 }
 0x970   : > { %p4208_p7 = pneg %p4207_p6 }
 0x972   : > { %p4215_p11 = pnand %p4214_p10, %p4208_p7 }
 0x974   : > { %4218 = shalt.err (!%p4215_p11)
}
 0x975   : > { %s4277_s25 = smov 128   ;;  %s4976_s20 = sld [smem:[#allocation15_spill]] }
 0x97b   : > { %4081 = dma.vmem_to_hbm [thread:$0]  (%p4915_p4), %s3630_s27, 256, %s4976_s20, [#allocation5], %s4277_s25, %s4277_s25, %s4273_s17  }
 0x97c   : > { %4246 = dma.done.wait (%p4915_p4), [#allocation5], 256  }
 0x97d   : > { %4248 = vsyncadd (%p4915_p4), [#allocation5], 4294967040 }
 0x97e PF: > { %s4977_s28 = sld [smem:[#allocation10_spill]] }
 0x97f   : > { %s4978_s25 = sld [smem:[#allocation9_spill]] }
 0x980   : > { %s4979_s26 = sld [smem:[#allocation11_spill]] }
 0x984   : > { %s25_s27 = sadd.s32 1, %s4977_s28  }
 0x985   : > { %p22_p12 = scmp.ge.s32.totalorder %s25_s27, 4  }
 0x987   :  { %24 = sbr.rel (!%p22_p12) target bundleno = 8 (0x8), region = 147 }
 0x98c   :  { %3645 = vsyncpa [#allocation4], 1 }
 0x98d   :  { %3647 = vsyncpa [#allocation4 + $0x1], 1 }
 0x98e   :  { %3648 = vsyncpa [#allocation5], 1 }
 0x98f   :  { %3650 = vsyncpa [#allocation5 + $0x1], 1 }

</bundles_post_ra>
